<compile_context>
chip_gen: v7x
topology: tpu7x:2x2x1
jax: 0.10.0
libtpu: 0.0.40
codegen_flags: <defaults>
</compile_context>

<pallas_src>
import math

import jax
import jax.numpy as jnp
from jax.experimental import pallas as pl
from jax.experimental.pallas import tpu as pltpu


# ----------------------------------------------------------------------------
# Pallas kernel
# ----------------------------------------------------------------------------
def _make_lstm_kernel(num_layers, hidden_size, seq_len, batch_pad, out_pad,
                      chunk_steps, unroll):
    """Kernel with statically-known L / H / S / Bp / Opad / T.

    Ref layout (positional):
      refs[0]                        : x_ref      (S*Bp, I)    bf16  VMEM in
      refs[1+3l] / [2+3l] / [3+3l]   : w_ih_l (in,4H) bf16, w_hh_l (H,4H) bf16,
                                       bias_l (1,4H) f32   (= b_ih + b_hh,
                                       g-block pre-scaled by 2)
      refs[1+3L]                     : w_lin      (H, Opad)    bf16
      refs[2+3L]                     : b_lin      (1, Opad)    f32
      refs[3+3L]                     : out_ref    (S*Bp, Opad) f32   VMEM out
      refs[4+3L]                     : seq_buf    (S*Bp, H)    bf16  scratch
      refs[5+3L]                     : gates_buf  (T*Bp, 4H)   f32   scratch
    """
    H, L, S, Bp = hidden_size, num_layers, seq_len, batch_pad
    T = chunk_steps
    n_chunks = (S + T - 1) // T
    use_mask = (H % 128) != 0   # mask trick only pays when gate blocks < 128 lanes

    def kernel(*refs):
        x_ref = refs[0]
        w_lin_ref = refs[1 + 3 * L]
        b_lin_ref = refs[2 + 3 * L]
        out_ref = refs[3 + 3 * L]
        seq_buf = refs[4 + 3 * L]      # (S*Bp, H)  bf16
        gates_buf = refs[5 + 3 * L]    # (T*Bp, 4H) f32

        if use_mask:
            # Hoisted loop-invariant lane mask: the "g" block uses
            # tanh(p) = 2*sigmoid(2p) - 1 (weights pre-scaled), i/f/o use sigmoid.
            lane = jax.lax.broadcasted_iota(jnp.int32, (Bp, 4 * H), 1)
            g_mask = (lane >= 2 * H) & (lane < 3 * H)

        for layer in range(L):
            w_ih_ref = refs[1 + 3 * layer]   # (in_dim, 4H) bf16
            w_hh_ref = refs[2 + 3 * layer]   # (H, 4H)      bf16
            b_ref = refs[3 + 3 * layer]      # (1, 4H)      f32

            carry = (jnp.zeros((Bp, H), jnp.float32),
                     jnp.zeros((Bp, H), jnp.float32))

            for ci in range(n_chunks):
                t0 = ci * T
                tc = min(T, S - t0)          # static per chunk
                rows = tc * Bp
                base = t0 * Bp

                # ---- (1) Chunked input projection: one MXU pass per chunk.
                if layer == 0:
                    x_chunk = x_ref[pl.ds(base, rows), :]          # bf16
                else:
                    x_chunk = seq_buf[pl.ds(base, rows), :]        # bf16
                gates_buf[pl.ds(0, rows), :] = (
                    jnp.dot(x_chunk, w_ih_ref[...],
                            preferred_element_type=jnp.float32)
                    + b_ref[...])

                # ---- (2) Serial recurrence: only h @ W_hh + elementwise,
                #          single full-width sigmoid per step.
                def step(t, carry, _base=base):
                    h, c_state = carry                             # (Bp, H) f32
                    grow = pl.multiple_of(t * Bp, Bp)
                    gates = gates_buf[pl.ds(grow, Bp), :] + jnp.dot(
                        h.astype(jnp.bfloat16), w_hh_ref[...],
                        preferred_element_type=jnp.float32)        # (Bp, 4H)
                    sig = jax.nn.sigmoid(gates)                    # one EUP pass
                    if use_mask:
                        act = jnp.where(g_mask, 2.0 * sig - 1.0, sig)
                        i_g = act[:, 0 * H:1 * H]
                        f_g = act[:, 1 * H:2 * H]
                        g_g = act[:, 2 * H:3 * H]
                        o_g = act[:, 3 * H:4 * H]
                    else:
                        i_g = sig[:, 0 * H:1 * H]
                        f_g = sig[:, 1 * H:2 * H]
                        g_g = 2.0 * sig[:, 2 * H:3 * H] - 1.0      # == tanh(pre)
                        o_g = sig[:, 3 * H:4 * H]
                    c_new = f_g * c_state + i_g * g_g
                    h_new = o_g * jnp.tanh(c_new)
                    seq_buf[pl.ds(_base + grow, Bp), :] = h_new.astype(jnp.bfloat16)
                    return (h_new, c_new)

                carry = jax.lax.fori_loop(0, tc, step, carry,
                                          unroll=min(tc, unroll))

        # ---- (3) Final Linear: one MXU pass + one lane-dense store.
        out_ref[...] = (
            jnp.dot(seq_buf[...], w_lin_ref[...],
                    preferred_element_type=jnp.float32)
            + b_lin_ref[...])

    return kernel


# ----------------------------------------------------------------------------
# Parameter init (PyTorch-style uniform(-1/sqrt(H), 1/sqrt(H))).
# Weight transposes / bias fusion / g-gate pre-scale / bf16 casts / output
# lane padding are all done ONCE here, not per forward call.
# ----------------------------------------------------------------------------
def init_lstm_driver_params(key, input_size, hidden_size, num_layers,
                            output_size):
    H = hidden_size
    bound = 1.0 / math.sqrt(H)
    layers = []
    for l in range(num_layers):
        in_dim = input_size if l == 0 else hidden_size
        key, k1, k2, k3, k4 = jax.random.split(key, 5)
        w_ih = jax.random.uniform(k1, (4 * H, in_dim), jnp.float32, -bound, bound)
        w_hh = jax.random.uniform(k2, (4 * H, H), jnp.float32, -bound, bound)
        b_ih = jax.random.uniform(k3, (4 * H,), jnp.float32, -bound, bound)
        b_hh = jax.random.uniform(k4, (4 * H,), jnp.float32, -bound, bound)
        # Transpose once; pre-scale the g-gate (2H:3H) block by 2 so the kernel
        # evaluates tanh(p) as 2*sigmoid(2p)-1 (single EUP pass per step).
        # The x2 is exponent-only, so it is exact and bf16-round-neutral.
        w_ih_t = jnp.transpose(w_ih).at[:, 2 * H:3 * H].multiply(2.0)
        w_hh_t = jnp.transpose(w_hh).at[:, 2 * H:3 * H].multiply(2.0)
        bias = (b_ih + b_hh).at[2 * H:3 * H].multiply(2.0)
        layers.append(dict(
            w_ih_t=w_ih_t.astype(jnp.bfloat16),                 # (in_dim, 4H)
            w_hh_t=w_hh_t.astype(jnp.bfloat16),                 # (H, 4H)
            bias=bias[None, :].astype(jnp.float32),             # (1, 4H)
        ))
    key, k5, k6 = jax.random.split(key, 3)
    w_lin = jax.random.uniform(k5, (output_size, H), jnp.float32, -bound, bound)
    b_lin = jax.random.uniform(k6, (output_size,), jnp.float32, -bound, bound)
    # Lane-dense final Linear: zero-pad the output dim to a multiple of 128 so
    # the single output store is an unmasked full-lane vst.
    o_pad = max(128, ((output_size + 127) // 128) * 128)
    w_lin_t = jnp.zeros((H, o_pad), jnp.float32).at[:, :output_size].set(
        jnp.transpose(w_lin))
    b_lin_p = jnp.zeros((1, o_pad), jnp.float32).at[0, :output_size].set(b_lin)
    return dict(
        layers=layers,
        w_lin_t=w_lin_t.astype(jnp.bfloat16),                   # (H, Opad)
        b_lin=b_lin_p,                                          # (1, Opad)
        hidden_size=hidden_size, num_layers=num_layers,
        output_size=output_size, output_pad=o_pad)


# ----------------------------------------------------------------------------
# Forward wrapper (equivalent to LSTMDriver.forward with zero initial hidden)
# ----------------------------------------------------------------------------
def lstm_driver_forward(params, x, chunk_steps=None):
    S, B, I = x.shape
    H = params["hidden_size"]
    L = params["num_layers"]
    O = params["output_size"]
    Opad = params["output_pad"]

    # Pad batch to a multiple of 16 so bf16 (Bp,H) seq_buf stores stay
    # (16,128)-tile aligned and every vector op is sublane-dense.
    Bp = ((B + 15) // 16) * 16
    if Bp != B:
        x = jnp.pad(x, ((0, 0), (0, Bp - B), (0, 0)))
    x2d = x.reshape(S * Bp, I).astype(jnp.bfloat16)

    # Time-chunk size for the hoisted input projection (bounds gates_buf VMEM).
    T = chunk_steps if chunk_steps is not None else min(S, 64)
    T = max(1, min(T, S))

    kernel_inputs = [x2d]
    for layer in params["layers"]:
        kernel_inputs += [layer["w_ih_t"], layer["w_hh_t"], layer["bias"]]
    kernel_inputs += [params["w_lin_t"], params["b_lin"]]

    # VMEM budget: single invocation (no grid) => nothing is double-buffered,
    # so size from the actual resident footprint; clamp per TPU generation.
    bytes_in = sum(int(a.size) * a.dtype.itemsize for a in kernel_inputs)
    bytes_out = S * Bp * Opad * 4
    bytes_scratch = S * Bp * H * 2 + T * Bp * 4 * H * 4
    need = bytes_in + bytes_out + bytes_scratch + (4 << 20)      # headroom
    try:
        cap = int(pltpu.get_tpu_info().vmem_capacity_bytes)
    except Exception:
        cap = 64 << 20
    vmem_limit = int(min(max(need, 16 << 20), int(0.8 * cap)))

    kernel = _make_lstm_kernel(L, H, S, Bp, Opad, T, unroll=min(T, 8))
    out2d = pl.pallas_call(
        kernel,
        out_shape=jax.ShapeDtypeStruct((S * Bp, Opad), jnp.float32),
        in_specs=[pl.BlockSpec(memory_space=pltpu.MemorySpace.VMEM)]
        * len(kernel_inputs),
        out_specs=pl.BlockSpec(memory_space=pltpu.MemorySpace.VMEM),
        scratch_shapes=[
            pltpu.VMEM((S * Bp, H), jnp.bfloat16),       # per-layer h sequence
            pltpu.VMEM((T * Bp, 4 * H), jnp.float32),    # chunked input-proj gates
        ],
        compiler_params=pltpu.CompilerParams(vmem_limit_bytes=vmem_limit),
    )(*kernel_inputs)

    return out2d.reshape(S, Bp, Opad)[:, :B, :O]


# ----------------------------------------------------------------------------
# Pure-JAX reference (mirrors the kernel's bf16 rounding points) for checking.
# ----------------------------------------------------------------------------
def _reference_forward(params, x):
    S, B, _ = x.shape
    H = params["hidden_size"]
    O = params["output_size"]

    def bf(a):
        return a.astype(jnp.bfloat16).astype(jnp.float32)

    seq = x.reshape(S, B, -1).astype(jnp.float32)
    for layer in params["layers"]:
        w_ih = layer["w_ih_t"].astype(jnp.float32)       # g-block pre-scaled
        w_hh = layer["w_hh_t"].astype(jnp.float32)
        b = layer["bias"][0]
        h = jnp.zeros((B, H), jnp.float32)
        c = jnp.zeros((B, H), jnp.float32)
        outs = []
        for t in range(S):
            g_all = bf(seq[t]) @ w_ih + bf(h) @ w_hh + b
            s = jax.nn.sigmoid(g_all)
            i_g, f_g = s[:, :H], s[:, H:2 * H]
            g_g = 2.0 * s[:, 2 * H:3 * H] - 1.0
            o_g = s[:, 3 * H:]
            c = f_g * c + i_g * g_g
            h = o_g * jnp.tanh(c)
            outs.append(bf(h))
        seq = jnp.stack(outs)                            # (S, B, H)
    w_lin = params["w_lin_t"].astype(jnp.float32)[:, :O]
    b_lin = params["b_lin"][:, :O]
    return (seq.reshape(S * B, H) @ w_lin + b_lin).reshape(S, B, O)


# ----------------------------------------------------------------------------
if __name__ == "__main__":
    # Small shapes consistent with the module's forward:
    #   input_size=16, hidden_size=32, num_layers=2, output_size=8, batch=2, seq=8
    input_size, hidden_size, num_layers, output_size, batch_size = 16, 32, 2, 8, 2
    seq_len = 8

    key = jax.random.PRNGKey(0)
    key, pkey, xkey = jax.random.split(key, 3)

    params = init_lstm_driver_params(
        pkey, input_size, hidden_size, num_layers, output_size)
    x = jax.random.normal(xkey, (seq_len, batch_size, input_size), jnp.float32)

    # chunk_steps=4 exercises the multi-chunk input-projection path (2 chunks).
    out = lstm_driver_forward(params, x, chunk_steps=4)
    jax.block_until_ready(out)
    assert out.shape == (seq_len, batch_size, output_size)

    ref = _reference_forward(params, x)
    err = float(jnp.max(jnp.abs(out - ref)))
    assert err < 2e-2, f"max abs err {err}"
    print("KERNEL_OK")
</pallas_src>

<mosaic_0001>
module attributes {stable_mosaic.version = 11 : i64} {
  func.func @kernel(%arg0: memref<128x16xbf16, #tpu.memory_space<vmem>>, %arg1: memref<16x128xbf16, #tpu.memory_space<vmem>>, %arg2: memref<32x128xbf16, #tpu.memory_space<vmem>>, %arg3: memref<1x128xf32, #tpu.memory_space<vmem>>, %arg4: memref<32x128xbf16, #tpu.memory_space<vmem>>, %arg5: memref<32x128xbf16, #tpu.memory_space<vmem>>, %arg6: memref<1x128xf32, #tpu.memory_space<vmem>>, %arg7: memref<32x128xbf16, #tpu.memory_space<vmem>>, %arg8: memref<1x128xf32, #tpu.memory_space<vmem>>, %arg9: memref<128x128xf32, #tpu.memory_space<vmem>>, %arg10: memref<128x32xbf16, #tpu.memory_space<vmem>>, %arg11: memref<64x128xf32, #tpu.memory_space<vmem>>) attributes {dimension_semantics = [], scalar_prefetch = 0 : i64, scratch_operands = 2 : i64, tpu.core_type = #tpu.core_type<tc>} {
    %0 = tpu.iota {dimensions = array<i32: 1>} : vector<16x128xi32>
    %c64_i32 = arith.constant 64 : i32
    %1 = vector.broadcast %c64_i32 : i32 to vector<16x128xi32>
    %2 = arith.cmpi sge, %0, %1 : vector<16x128xi32>
    %c96_i32 = arith.constant 96 : i32
    %3 = vector.broadcast %c96_i32 : i32 to vector<16x128xi32>
    %4 = arith.cmpi slt, %0, %3 : vector<16x128xi32>
    %5 = arith.andi %2, %4 : vector<16x128xi1>
    %cst = arith.constant 0.000000e+00 : f32
    %6 = vector.broadcast %cst : f32 to vector<16x32xf32>
    %cst_0 = arith.constant 0.000000e+00 : f32
    %7 = vector.broadcast %cst_0 : f32 to vector<16x32xf32>
    %c0 = arith.constant 0 : index
    %c0_1 = arith.constant 0 : index
    %8 = vector.load %arg0[%c0, %c0_1] : memref<128x16xbf16, #tpu.memory_space<vmem>>, vector<64x16xbf16>
    %c0_2 = arith.constant 0 : index
    %c0_3 = arith.constant 0 : index
    %9 = vector.load %arg1[%c0_2, %c0_3] : memref<16x128xbf16, #tpu.memory_space<vmem>>, vector<16x128xbf16>
    %cst_4 = arith.constant dense<0.000000e+00> : vector<64x128xf32>
    %10 = tpu.matmul %8, %9, %cst_4 {dimension_numbers = #tpu.dot_dimension_numbers<[1], [0], [0], [1], [0, 0, 1, 1], [], []>} : vector<64x16xbf16>, vector<16x128xbf16>, vector<64x128xf32> -> vector<64x128xf32>
    %c0_5 = arith.constant 0 : index
    %c0_6 = arith.constant 0 : index
    %11 = vector.load %arg3[%c0_5, %c0_6] : memref<1x128xf32, #tpu.memory_space<vmem>>, vector<1x128xf32>
    %12 = vector.broadcast %11 : vector<1x128xf32> to vector<64x128xf32>
    %13 = arith.addf %10, %12 : vector<64x128xf32>
    %c0_7 = arith.constant 0 : index
    %c0_8 = arith.constant 0 : index
    %14 = vector.load %arg11[%c0_7, %c0_8] : memref<64x128xf32, #tpu.memory_space<vmem>>, vector<64x128xf32>
    tpu.vector_store %arg11[%c0_7, %c0_8], %13 {strides = array<i32>} : memref<64x128xf32, #tpu.memory_space<vmem>>, vector<64x128xf32>,
    %c0_i32 = arith.constant 0 : i32
    %c16_i32 = arith.constant 16 : i32
    %15 = arith.muli %c0_i32, %c16_i32 : i32
    %16 = tpu.assume_multiple %15, 16 : i32
    %17 = arith.index_cast %16 : i32 to index
    %c0_9 = arith.constant 0 : index
    %18 = vector.load %arg11[%17, %c0_9] : memref<64x128xf32, #tpu.memory_space<vmem>>, vector<16x128xf32>
    %19 = arith.truncf %6 : vector<16x32xf32> to vector<16x32xbf16>
    %c0_10 = arith.constant 0 : index
    %c0_11 = arith.constant 0 : index
    %20 = vector.load %arg2[%c0_10, %c0_11] : memref<32x128xbf16, #tpu.memory_space<vmem>>, vector<32x128xbf16>
    %cst_12 = arith.constant dense<0.000000e+00> : vector<16x128xf32>
    %21 = tpu.matmul %19, %20, %cst_12 {dimension_numbers = #tpu.dot_dimension_numbers<[1], [0], [0], [1], [0, 0, 1, 1], [], []>} : vector<16x32xbf16>, vector<32x128xbf16>, vector<16x128xf32> -> vector<16x128xf32>
    %22 = arith.addf %18, %21 : vector<16x128xf32>
    %23 = arith.negf %22 : vector<16x128xf32>
    %24 = math.exp %23 : vector<16x128xf32>
    %cst_13 = arith.constant 1.000000e+00 : f32
    %25 = vector.broadcast %cst_13 : f32 to vector<16x128xf32>
    %26 = arith.addf %25, %24 : vector<16x128xf32>
    %27 = arith.divf %25, %26 : vector<16x128xf32>
    %cst_14 = arith.constant 2.000000e+00 : f32
    %28 = vector.broadcast %cst_14 : f32 to vector<16x128xf32>
    %29 = arith.mulf %28, %27 : vector<16x128xf32>
    %cst_15 = arith.constant 1.000000e+00 : f32
    %30 = vector.broadcast %cst_15 : f32 to vector<16x128xf32>
    %31 = arith.subf %29, %30 : vector<16x128xf32>
    %32 = arith.select %5, %31, %27 : vector<16x128xi1>, vector<16x128xf32>
    %33 = vector.extract_strided_slice %32 {offsets = [0, 0], sizes = [16, 32], strides = [1, 1]} : vector<16x128xf32> to vector<16x32xf32>
    %34 = vector.extract_strided_slice %32 {offsets = [0, 32], sizes = [16, 32], strides = [1, 1]} : vector<16x128xf32> to vector<16x32xf32>
    %35 = vector.extract_strided_slice %32 {offsets = [0, 64], sizes = [16, 32], strides = [1, 1]} : vector<16x128xf32> to vector<16x32xf32>
    %36 = vector.extract_strided_slice %32 {offsets = [0, 96], sizes = [16, 32], strides = [1, 1]} : vector<16x128xf32> to vector<16x32xf32>
    %37 = arith.mulf %34, %7 : vector<16x32xf32>
    %38 = arith.mulf %33, %35 : vector<16x32xf32>
    %39 = arith.addf %37, %38 : vector<16x32xf32>
    %40 = math.tanh %39 : vector<16x32xf32>
    %41 = arith.mulf %36, %40 : vector<16x32xf32>
    %42 = arith.truncf %41 : vector<16x32xf32> to vector<16x32xbf16>
    %c0_i32_16 = arith.constant 0 : i32
    %43 = arith.addi %c0_i32_16, %16 : i32
    %44 = arith.index_cast %43 : i32 to index
    %c0_17 = arith.constant 0 : index
    %45 = vector.load %arg10[%44, %c0_17] : memref<128x32xbf16, #tpu.memory_space<vmem>>, vector<16x32xbf16>
    tpu.vector_store %arg10[%44, %c0_17], %42 {strides = array<i32>} : memref<128x32xbf16, #tpu.memory_space<vmem>>, vector<16x32xbf16>,
    %c1_i32 = arith.constant 1 : i32
    %c16_i32_18 = arith.constant 16 : i32
    %46 = arith.muli %c1_i32, %c16_i32_18 : i32
    %47 = tpu.assume_multiple %46, 16 : i32
    %48 = arith.index_cast %47 : i32 to index
    %c0_19 = arith.constant 0 : index
    %49 = vector.load %arg11[%48, %c0_19] : memref<64x128xf32, #tpu.memory_space<vmem>>, vector<16x128xf32>
    %50 = arith.truncf %41 : vector<16x32xf32> to vector<16x32xbf16>
    %c0_20 = arith.constant 0 : index
    %c0_21 = arith.constant 0 : index
    %51 = vector.load %arg2[%c0_20, %c0_21] : memref<32x128xbf16, #tpu.memory_space<vmem>>, vector<32x128xbf16>
    %cst_22 = arith.constant dense<0.000000e+00> : vector<16x128xf32>
    %52 = tpu.matmul %50, %51, %cst_22 {dimension_numbers = #tpu.dot_dimension_numbers<[1], [0], [0], [1], [0, 0, 1, 1], [], []>} : vector<16x32xbf16>, vector<32x128xbf16>, vector<16x128xf32> -> vector<16x128xf32>
    %53 = arith.addf %49, %52 : vector<16x128xf32>
    %54 = arith.negf %53 : vector<16x128xf32>
    %55 = math.exp %54 : vector<16x128xf32>
    %cst_23 = arith.constant 1.000000e+00 : f32
    %56 = vector.broadcast %cst_23 : f32 to vector<16x128xf32>
    %57 = arith.addf %56, %55 : vector<16x128xf32>
    %58 = arith.divf %56, %57 : vector<16x128xf32>
    %cst_24 = arith.constant 2.000000e+00 : f32
    %59 = vector.broadcast %cst_24 : f32 to vector<16x128xf32>
    %60 = arith.mulf %59, %58 : vector<16x128xf32>
    %cst_25 = arith.constant 1.000000e+00 : f32
    %61 = vector.broadcast %cst_25 : f32 to vector<16x128xf32>
    %62 = arith.subf %60, %61 : vector<16x128xf32>
    %63 = arith.select %5, %62, %58 : vector<16x128xi1>, vector<16x128xf32>
    %64 = vector.extract_strided_slice %63 {offsets = [0, 0], sizes = [16, 32], strides = [1, 1]} : vector<16x128xf32> to vector<16x32xf32>
    %65 = vector.extract_strided_slice %63 {offsets = [0, 32], sizes = [16, 32], strides = [1, 1]} : vector<16x128xf32> to vector<16x32xf32>
    %66 = vector.extract_strided_slice %63 {offsets = [0, 64], sizes = [16, 32], strides = [1, 1]} : vector<16x128xf32> to vector<16x32xf32>
    %67 = vector.extract_strided_slice %63 {offsets = [0, 96], sizes = [16, 32], strides = [1, 1]} : vector<16x128xf32> to vector<16x32xf32>
    %68 = arith.mulf %65, %39 : vector<16x32xf32>
    %69 = arith.mulf %64, %66 : vector<16x32xf32>
    %70 = arith.addf %68, %69 : vector<16x32xf32>
    %71 = math.tanh %70 : vector<16x32xf32>
    %72 = arith.mulf %67, %71 : vector<16x32xf32>
    %73 = arith.truncf %72 : vector<16x32xf32> to vector<16x32xbf16>
    %c0_i32_26 = arith.constant 0 : i32
    %74 = arith.addi %c0_i32_26, %47 : i32
    %75 = arith.index_cast %74 : i32 to index
    %c0_27 = arith.constant 0 : index
    %76 = vector.load %arg10[%75, %c0_27] : memref<128x32xbf16, #tpu.memory_space<vmem>>, vector<16x32xbf16>
    tpu.vector_store %arg10[%75, %c0_27], %73 {strides = array<i32>} : memref<128x32xbf16, #tpu.memory_space<vmem>>, vector<16x32xbf16>,
    %c2_i32 = arith.constant 2 : i32
    %c16_i32_28 = arith.constant 16 : i32
    %77 = arith.muli %c2_i32, %c16_i32_28 : i32
    %78 = tpu.assume_multiple %77, 16 : i32
    %79 = arith.index_cast %78 : i32 to index
    %c0_29 = arith.constant 0 : index
    %80 = vector.load %arg11[%79, %c0_29] : memref<64x128xf32, #tpu.memory_space<vmem>>, vector<16x128xf32>
    %81 = arith.truncf %72 : vector<16x32xf32> to vector<16x32xbf16>
    %c0_30 = arith.constant 0 : index
    %c0_31 = arith.constant 0 : index
    %82 = vector.load %arg2[%c0_30, %c0_31] : memref<32x128xbf16, #tpu.memory_space<vmem>>, vector<32x128xbf16>
    %cst_32 = arith.constant dense<0.000000e+00> : vector<16x128xf32>
    %83 = tpu.matmul %81, %82, %cst_32 {dimension_numbers = #tpu.dot_dimension_numbers<[1], [0], [0], [1], [0, 0, 1, 1], [], []>} : vector<16x32xbf16>, vector<32x128xbf16>, vector<16x128xf32> -> vector<16x128xf32>
    %84 = arith.addf %80, %83 : vector<16x128xf32>
    %85 = arith.negf %84 : vector<16x128xf32>
    %86 = math.exp %85 : vector<16x128xf32>
    %cst_33 = arith.constant 1.000000e+00 : f32
    %87 = vector.broadcast %cst_33 : f32 to vector<16x128xf32>
    %88 = arith.addf %87, %86 : vector<16x128xf32>
    %89 = arith.divf %87, %88 : vector<16x128xf32>
    %cst_34 = arith.constant 2.000000e+00 : f32
    %90 = vector.broadcast %cst_34 : f32 to vector<16x128xf32>
    %91 = arith.mulf %90, %89 : vector<16x128xf32>
    %cst_35 = arith.constant 1.000000e+00 : f32
    %92 = vector.broadcast %cst_35 : f32 to vector<16x128xf32>
    %93 = arith.subf %91, %92 : vector<16x128xf32>
    %94 = arith.select %5, %93, %89 : vector<16x128xi1>, vector<16x128xf32>
    %95 = vector.extract_strided_slice %94 {offsets = [0, 0], sizes = [16, 32], strides = [1, 1]} : vector<16x128xf32> to vector<16x32xf32>
    %96 = vector.extract_strided_slice %94 {offsets = [0, 32], sizes = [16, 32], strides = [1, 1]} : vector<16x128xf32> to vector<16x32xf32>
    %97 = vector.extract_strided_slice %94 {offsets = [0, 64], sizes = [16, 32], strides = [1, 1]} : vector<16x128xf32> to vector<16x32xf32>
    %98 = vector.extract_strided_slice %94 {offsets = [0, 96], sizes = [16, 32], strides = [1, 1]} : vector<16x128xf32> to vector<16x32xf32>
    %99 = arith.mulf %96, %70 : vector<16x32xf32>
    %100 = arith.mulf %95, %97 : vector<16x32xf32>
    %101 = arith.addf %99, %100 : vector<16x32xf32>
    %102 = math.tanh %101 : vector<16x32xf32>
    %103 = arith.mulf %98, %102 : vector<16x32xf32>
    %104 = arith.truncf %103 : vector<16x32xf32> to vector<16x32xbf16>
    %c0_i32_36 = arith.constant 0 : i32
    %105 = arith.addi %c0_i32_36, %78 : i32
    %106 = arith.index_cast %105 : i32 to index
    %c0_37 = arith.constant 0 : index
    %107 = vector.load %arg10[%106, %c0_37] : memref<128x32xbf16, #tpu.memory_space<vmem>>, vector<16x32xbf16>
    tpu.vector_store %arg10[%106, %c0_37], %104 {strides = array<i32>} : memref<128x32xbf16, #tpu.memory_space<vmem>>, vector<16x32xbf16>,
    %c3_i32 = arith.constant 3 : i32
    %c16_i32_38 = arith.constant 16 : i32
    %108 = arith.muli %c3_i32, %c16_i32_38 : i32
    %109 = tpu.assume_multiple %108, 16 : i32
    %110 = arith.index_cast %109 : i32 to index
    %c0_39 = arith.constant 0 : index
    %111 = vector.load %arg11[%110, %c0_39] : memref<64x128xf32, #tpu.memory_space<vmem>>, vector<16x128xf32>
    %112 = arith.truncf %103 : vector<16x32xf32> to vector<16x32xbf16>
    %c0_40 = arith.constant 0 : index
    %c0_41 = arith.constant 0 : index
    %113 = vector.load %arg2[%c0_40, %c0_41] : memref<32x128xbf16, #tpu.memory_space<vmem>>, vector<32x128xbf16>
    %cst_42 = arith.constant dense<0.000000e+00> : vector<16x128xf32>
    %114 = tpu.matmul %112, %113, %cst_42 {dimension_numbers = #tpu.dot_dimension_numbers<[1], [0], [0], [1], [0, 0, 1, 1], [], []>} : vector<16x32xbf16>, vector<32x128xbf16>, vector<16x128xf32> -> vector<16x128xf32>
    %115 = arith.addf %111, %114 : vector<16x128xf32>
    %116 = arith.negf %115 : vector<16x128xf32>
    %117 = math.exp %116 : vector<16x128xf32>
    %cst_43 = arith.constant 1.000000e+00 : f32
    %118 = vector.broadcast %cst_43 : f32 to vector<16x128xf32>
    %119 = arith.addf %118, %117 : vector<16x128xf32>
    %120 = arith.divf %118, %119 : vector<16x128xf32>
    %cst_44 = arith.constant 2.000000e+00 : f32
    %121 = vector.broadcast %cst_44 : f32 to vector<16x128xf32>
    %122 = arith.mulf %121, %120 : vector<16x128xf32>
    %cst_45 = arith.constant 1.000000e+00 : f32
    %123 = vector.broadcast %cst_45 : f32 to vector<16x128xf32>
    %124 = arith.subf %122, %123 : vector<16x128xf32>
    %125 = arith.select %5, %124, %120 : vector<16x128xi1>, vector<16x128xf32>
    %126 = vector.extract_strided_slice %125 {offsets = [0, 0], sizes = [16, 32], strides = [1, 1]} : vector<16x128xf32> to vector<16x32xf32>
    %127 = vector.extract_strided_slice %125 {offsets = [0, 32], sizes = [16, 32], strides = [1, 1]} : vector<16x128xf32> to vector<16x32xf32>
    %128 = vector.extract_strided_slice %125 {offsets = [0, 64], sizes = [16, 32], strides = [1, 1]} : vector<16x128xf32> to vector<16x32xf32>
    %129 = vector.extract_strided_slice %125 {offsets = [0, 96], sizes = [16, 32], strides = [1, 1]} : vector<16x128xf32> to vector<16x32xf32>
    %130 = arith.mulf %127, %101 : vector<16x32xf32>
    %131 = arith.mulf %126, %128 : vector<16x32xf32>
    %132 = arith.addf %130, %131 : vector<16x32xf32>
    %133 = math.tanh %132 : vector<16x32xf32>
    %134 = arith.mulf %129, %133 : vector<16x32xf32>
    %135 = arith.truncf %134 : vector<16x32xf32> to vector<16x32xbf16>
    %c0_i32_46 = arith.constant 0 : i32
    %136 = arith.addi %c0_i32_46, %109 : i32
    %137 = arith.index_cast %136 : i32 to index
    %c0_47 = arith.constant 0 : index
    %138 = vector.load %arg10[%137, %c0_47] : memref<128x32xbf16, #tpu.memory_space<vmem>>, vector<16x32xbf16>
    tpu.vector_store %arg10[%137, %c0_47], %135 {strides = array<i32>} : memref<128x32xbf16, #tpu.memory_space<vmem>>, vector<16x32xbf16>,
    %c4_i32 = arith.constant 4 : i32
    %c64 = arith.constant 64 : index
    %c0_48 = arith.constant 0 : index
    %139 = vector.load %arg0[%c64, %c0_48] : memref<128x16xbf16, #tpu.memory_space<vmem>>, vector<64x16xbf16>
    %c0_49 = arith.constant 0 : index
    %c0_50 = arith.constant 0 : index
    %140 = vector.load %arg1[%c0_49, %c0_50] : memref<16x128xbf16, #tpu.memory_space<vmem>>, vector<16x128xbf16>
    %cst_51 = arith.constant dense<0.000000e+00> : vector<64x128xf32>
    %141 = tpu.matmul %139, %140, %cst_51 {dimension_numbers = #tpu.dot_dimension_numbers<[1], [0], [0], [1], [0, 0, 1, 1], [], []>} : vector<64x16xbf16>, vector<16x128xbf16>, vector<64x128xf32> -> vector<64x128xf32>
    %c0_52 = arith.constant 0 : index
    %c0_53 = arith.constant 0 : index
    %142 = vector.load %arg3[%c0_52, %c0_53] : memref<1x128xf32, #tpu.memory_space<vmem>>, vector<1x128xf32>
    %143 = vector.broadcast %142 : vector<1x128xf32> to vector<64x128xf32>
    %144 = arith.addf %141, %143 : vector<64x128xf32>
    %c0_54 = arith.constant 0 : index
    %c0_55 = arith.constant 0 : index
    %145 = vector.load %arg11[%c0_54, %c0_55] : memref<64x128xf32, #tpu.memory_space<vmem>>, vector<64x128xf32>
    tpu.vector_store %arg11[%c0_54, %c0_55], %144 {strides = array<i32>} : memref<64x128xf32, #tpu.memory_space<vmem>>, vector<64x128xf32>,
    %c0_i32_56 = arith.constant 0 : i32
    %c16_i32_57 = arith.constant 16 : i32
    %146 = arith.muli %c0_i32_56, %c16_i32_57 : i32
    %147 = tpu.assume_multiple %146, 16 : i32
    %148 = arith.index_cast %147 : i32 to index
    %c0_58 = arith.constant 0 : index
    %149 = vector.load %arg11[%148, %c0_58] : memref<64x128xf32, #tpu.memory_space<vmem>>, vector<16x128xf32>
    %150 = arith.truncf %134 : vector<16x32xf32> to vector<16x32xbf16>
    %c0_59 = arith.constant 0 : index
    %c0_60 = arith.constant 0 : index
    %151 = vector.load %arg2[%c0_59, %c0_60] : memref<32x128xbf16, #tpu.memory_space<vmem>>, vector<32x128xbf16>
    %cst_61 = arith.constant dense<0.000000e+00> : vector<16x128xf32>
    %152 = tpu.matmul %150, %151, %cst_61 {dimension_numbers = #tpu.dot_dimension_numbers<[1], [0], [0], [1], [0, 0, 1, 1], [], []>} : vector<16x32xbf16>, vector<32x128xbf16>, vector<16x128xf32> -> vector<16x128xf32>
    %153 = arith.addf %149, %152 : vector<16x128xf32>
    %154 = arith.negf %153 : vector<16x128xf32>
    %155 = math.exp %154 : vector<16x128xf32>
    %cst_62 = arith.constant 1.000000e+00 : f32
    %156 = vector.broadcast %cst_62 : f32 to vector<16x128xf32>
    %157 = arith.addf %156, %155 : vector<16x128xf32>
    %158 = arith.divf %156, %157 : vector<16x128xf32>
    %cst_63 = arith.constant 2.000000e+00 : f32
    %159 = vector.broadcast %cst_63 : f32 to vector<16x128xf32>
    %160 = arith.mulf %159, %158 : vector<16x128xf32>
    %cst_64 = arith.constant 1.000000e+00 : f32
    %161 = vector.broadcast %cst_64 : f32 to vector<16x128xf32>
    %162 = arith.subf %160, %161 : vector<16x128xf32>
    %163 = arith.select %5, %162, %158 : vector<16x128xi1>, vector<16x128xf32>
    %164 = vector.extract_strided_slice %163 {offsets = [0, 0], sizes = [16, 32], strides = [1, 1]} : vector<16x128xf32> to vector<16x32xf32>
    %165 = vector.extract_strided_slice %163 {offsets = [0, 32], sizes = [16, 32], strides = [1, 1]} : vector<16x128xf32> to vector<16x32xf32>
    %166 = vector.extract_strided_slice %163 {offsets = [0, 64], sizes = [16, 32], strides = [1, 1]} : vector<16x128xf32> to vector<16x32xf32>
    %167 = vector.extract_strided_slice %163 {offsets = [0, 96], sizes = [16, 32], strides = [1, 1]} : vector<16x128xf32> to vector<16x32xf32>
    %168 = arith.mulf %165, %132 : vector<16x32xf32>
    %169 = arith.mulf %164, %166 : vector<16x32xf32>
    %170 = arith.addf %168, %169 : vector<16x32xf32>
    %171 = math.tanh %170 : vector<16x32xf32>
    %172 = arith.mulf %167, %171 : vector<16x32xf32>
    %173 = arith.truncf %172 : vector<16x32xf32> to vector<16x32xbf16>
    %c64_i32_65 = arith.constant 64 : i32
    %174 = arith.addi %c64_i32_65, %147 : i32
    %175 = arith.index_cast %174 : i32 to index
    %c0_66 = arith.constant 0 : index
    %176 = vector.load %arg10[%175, %c0_66] : memref<128x32xbf16, #tpu.memory_space<vmem>>, vector<16x32xbf16>
    tpu.vector_store %arg10[%175, %c0_66], %173 {strides = array<i32>} : memref<128x32xbf16, #tpu.memory_space<vmem>>, vector<16x32xbf16>,
    %c1_i32_67 = arith.constant 1 : i32
    %c16_i32_68 = arith.constant 16 : i32
    %177 = arith.muli %c1_i32_67, %c16_i32_68 : i32
    %178 = tpu.assume_multiple %177, 16 : i32
    %179 = arith.index_cast %178 : i32 to index
    %c0_69 = arith.constant 0 : index
    %180 = vector.load %arg11[%179, %c0_69] : memref<64x128xf32, #tpu.memory_space<vmem>>, vector<16x128xf32>
    %181 = arith.truncf %172 : vector<16x32xf32> to vector<16x32xbf16>
    %c0_70 = arith.constant 0 : index
    %c0_71 = arith.constant 0 : index
    %182 = vector.load %arg2[%c0_70, %c0_71] : memref<32x128xbf16, #tpu.memory_space<vmem>>, vector<32x128xbf16>
    %cst_72 = arith.constant dense<0.000000e+00> : vector<16x128xf32>
    %183 = tpu.matmul %181, %182, %cst_72 {dimension_numbers = #tpu.dot_dimension_numbers<[1], [0], [0], [1], [0, 0, 1, 1], [], []>} : vector<16x32xbf16>, vector<32x128xbf16>, vector<16x128xf32> -> vector<16x128xf32>
    %184 = arith.addf %180, %183 : vector<16x128xf32>
    %185 = arith.negf %184 : vector<16x128xf32>
    %186 = math.exp %185 : vector<16x128xf32>
    %cst_73 = arith.constant 1.000000e+00 : f32
    %187 = vector.broadcast %cst_73 : f32 to vector<16x128xf32>
    %188 = arith.addf %187, %186 : vector<16x128xf32>
    %189 = arith.divf %187, %188 : vector<16x128xf32>
    %cst_74 = arith.constant 2.000000e+00 : f32
    %190 = vector.broadcast %cst_74 : f32 to vector<16x128xf32>
    %191 = arith.mulf %190, %189 : vector<16x128xf32>
    %cst_75 = arith.constant 1.000000e+00 : f32
    %192 = vector.broadcast %cst_75 : f32 to vector<16x128xf32>
    %193 = arith.subf %191, %192 : vector<16x128xf32>
    %194 = arith.select %5, %193, %189 : vector<16x128xi1>, vector<16x128xf32>
    %195 = vector.extract_strided_slice %194 {offsets = [0, 0], sizes = [16, 32], strides = [1, 1]} : vector<16x128xf32> to vector<16x32xf32>
    %196 = vector.extract_strided_slice %194 {offsets = [0, 32], sizes = [16, 32], strides = [1, 1]} : vector<16x128xf32> to vector<16x32xf32>
    %197 = vector.extract_strided_slice %194 {offsets = [0, 64], sizes = [16, 32], strides = [1, 1]} : vector<16x128xf32> to vector<16x32xf32>
    %198 = vector.extract_strided_slice %194 {offsets = [0, 96], sizes = [16, 32], strides = [1, 1]} : vector<16x128xf32> to vector<16x32xf32>
    %199 = arith.mulf %196, %170 : vector<16x32xf32>
    %200 = arith.mulf %195, %197 : vector<16x32xf32>
    %201 = arith.addf %199, %200 : vector<16x32xf32>
    %202 = math.tanh %201 : vector<16x32xf32>
    %203 = arith.mulf %198, %202 : vector<16x32xf32>
    %204 = arith.truncf %203 : vector<16x32xf32> to vector<16x32xbf16>
    %c64_i32_76 = arith.constant 64 : i32
    %205 = arith.addi %c64_i32_76, %178 : i32
    %206 = arith.index_cast %205 : i32 to index
    %c0_77 = arith.constant 0 : index
    %207 = vector.load %arg10[%206, %c0_77] : memref<128x32xbf16, #tpu.memory_space<vmem>>, vector<16x32xbf16>
    tpu.vector_store %arg10[%206, %c0_77], %204 {strides = array<i32>} : memref<128x32xbf16, #tpu.memory_space<vmem>>, vector<16x32xbf16>,
    %c2_i32_78 = arith.constant 2 : i32
    %c16_i32_79 = arith.constant 16 : i32
    %208 = arith.muli %c2_i32_78, %c16_i32_79 : i32
    %209 = tpu.assume_multiple %208, 16 : i32
    %210 = arith.index_cast %209 : i32 to index
    %c0_80 = arith.constant 0 : index
    %211 = vector.load %arg11[%210, %c0_80] : memref<64x128xf32, #tpu.memory_space<vmem>>, vector<16x128xf32>
    %212 = arith.truncf %203 : vector<16x32xf32> to vector<16x32xbf16>
    %c0_81 = arith.constant 0 : index
    %c0_82 = arith.constant 0 : index
    %213 = vector.load %arg2[%c0_81, %c0_82] : memref<32x128xbf16, #tpu.memory_space<vmem>>, vector<32x128xbf16>
    %cst_83 = arith.constant dense<0.000000e+00> : vector<16x128xf32>
    %214 = tpu.matmul %212, %213, %cst_83 {dimension_numbers = #tpu.dot_dimension_numbers<[1], [0], [0], [1], [0, 0, 1, 1], [], []>} : vector<16x32xbf16>, vector<32x128xbf16>, vector<16x128xf32> -> vector<16x128xf32>
    %215 = arith.addf %211, %214 : vector<16x128xf32>
    %216 = arith.negf %215 : vector<16x128xf32>
    %217 = math.exp %216 : vector<16x128xf32>
    %cst_84 = arith.constant 1.000000e+00 : f32
    %218 = vector.broadcast %cst_84 : f32 to vector<16x128xf32>
    %219 = arith.addf %218, %217 : vector<16x128xf32>
    %220 = arith.divf %218, %219 : vector<16x128xf32>
    %cst_85 = arith.constant 2.000000e+00 : f32
    %221 = vector.broadcast %cst_85 : f32 to vector<16x128xf32>
    %222 = arith.mulf %221, %220 : vector<16x128xf32>
    %cst_86 = arith.constant 1.000000e+00 : f32
    %223 = vector.broadcast %cst_86 : f32 to vector<16x128xf32>
    %224 = arith.subf %222, %223 : vector<16x128xf32>
    %225 = arith.select %5, %224, %220 : vector<16x128xi1>, vector<16x128xf32>
    %226 = vector.extract_strided_slice %225 {offsets = [0, 0], sizes = [16, 32], strides = [1, 1]} : vector<16x128xf32> to vector<16x32xf32>
    %227 = vector.extract_strided_slice %225 {offsets = [0, 32], sizes = [16, 32], strides = [1, 1]} : vector<16x128xf32> to vector<16x32xf32>
    %228 = vector.extract_strided_slice %225 {offsets = [0, 64], sizes = [16, 32], strides = [1, 1]} : vector<16x128xf32> to vector<16x32xf32>
    %229 = vector.extract_strided_slice %225 {offsets = [0, 96], sizes = [16, 32], strides = [1, 1]} : vector<16x128xf32> to vector<16x32xf32>
    %230 = arith.mulf %227, %201 : vector<16x32xf32>
    %231 = arith.mulf %226, %228 : vector<16x32xf32>
    %232 = arith.addf %230, %231 : vector<16x32xf32>
    %233 = math.tanh %232 : vector<16x32xf32>
    %234 = arith.mulf %229, %233 : vector<16x32xf32>
    %235 = arith.truncf %234 : vector<16x32xf32> to vector<16x32xbf16>
    %c64_i32_87 = arith.constant 64 : i32
    %236 = arith.addi %c64_i32_87, %209 : i32
    %237 = arith.index_cast %236 : i32 to index
    %c0_88 = arith.constant 0 : index
    %238 = vector.load %arg10[%237, %c0_88] : memref<128x32xbf16, #tpu.memory_space<vmem>>, vector<16x32xbf16>
    tpu.vector_store %arg10[%237, %c0_88], %235 {strides = array<i32>} : memref<128x32xbf16, #tpu.memory_space<vmem>>, vector<16x32xbf16>,
    %c3_i32_89 = arith.constant 3 : i32
    %c16_i32_90 = arith.constant 16 : i32
    %239 = arith.muli %c3_i32_89, %c16_i32_90 : i32
    %240 = tpu.assume_multiple %239, 16 : i32
    %241 = arith.index_cast %240 : i32 to index
    %c0_91 = arith.constant 0 : index
    %242 = vector.load %arg11[%241, %c0_91] : memref<64x128xf32, #tpu.memory_space<vmem>>, vector<16x128xf32>
    %243 = arith.truncf %234 : vector<16x32xf32> to vector<16x32xbf16>
    %c0_92 = arith.constant 0 : index
    %c0_93 = arith.constant 0 : index
    %244 = vector.load %arg2[%c0_92, %c0_93] : memref<32x128xbf16, #tpu.memory_space<vmem>>, vector<32x128xbf16>
    %cst_94 = arith.constant dense<0.000000e+00> : vector<16x128xf32>
    %245 = tpu.matmul %243, %244, %cst_94 {dimension_numbers = #tpu.dot_dimension_numbers<[1], [0], [0], [1], [0, 0, 1, 1], [], []>} : vector<16x32xbf16>, vector<32x128xbf16>, vector<16x128xf32> -> vector<16x128xf32>
    %246 = arith.addf %242, %245 : vector<16x128xf32>
    %247 = arith.negf %246 : vector<16x128xf32>
    %248 = math.exp %247 : vector<16x128xf32>
    %cst_95 = arith.constant 1.000000e+00 : f32
    %249 = vector.broadcast %cst_95 : f32 to vector<16x128xf32>
    %250 = arith.addf %249, %248 : vector<16x128xf32>
    %251 = arith.divf %249, %250 : vector<16x128xf32>
    %cst_96 = arith.constant 2.000000e+00 : f32
    %252 = vector.broadcast %cst_96 : f32 to vector<16x128xf32>
    %253 = arith.mulf %252, %251 : vector<16x128xf32>
    %cst_97 = arith.constant 1.000000e+00 : f32
    %254 = vector.broadcast %cst_97 : f32 to vector<16x128xf32>
    %255 = arith.subf %253, %254 : vector<16x128xf32>
    %256 = arith.select %5, %255, %251 : vector<16x128xi1>, vector<16x128xf32>
    %257 = vector.extract_strided_slice %256 {offsets = [0, 0], sizes = [16, 32], strides = [1, 1]} : vector<16x128xf32> to vector<16x32xf32>
    %258 = vector.extract_strided_slice %256 {offsets = [0, 32], sizes = [16, 32], strides = [1, 1]} : vector<16x128xf32> to vector<16x32xf32>
    %259 = vector.extract_strided_slice %256 {offsets = [0, 64], sizes = [16, 32], strides = [1, 1]} : vector<16x128xf32> to vector<16x32xf32>
    %260 = vector.extract_strided_slice %256 {offsets = [0, 96], sizes = [16, 32], strides = [1, 1]} : vector<16x128xf32> to vector<16x32xf32>
    %261 = arith.mulf %258, %232 : vector<16x32xf32>
    %262 = arith.mulf %257, %259 : vector<16x32xf32>
    %263 = arith.addf %261, %262 : vector<16x32xf32>
    %264 = math.tanh %263 : vector<16x32xf32>
    %265 = arith.mulf %260, %264 : vector<16x32xf32>
    %266 = arith.truncf %265 : vector<16x32xf32> to vector<16x32xbf16>
    %c64_i32_98 = arith.constant 64 : i32
    %267 = arith.addi %c64_i32_98, %240 : i32
    %268 = arith.index_cast %267 : i32 to index
    %c0_99 = arith.constant 0 : index
    %269 = vector.load %arg10[%268, %c0_99] : memref<128x32xbf16, #tpu.memory_space<vmem>>, vector<16x32xbf16>
    tpu.vector_store %arg10[%268, %c0_99], %266 {strides = array<i32>} : memref<128x32xbf16, #tpu.memory_space<vmem>>, vector<16x32xbf16>,
    %c4_i32_100 = arith.constant 4 : i32
    %cst_101 = arith.constant 0.000000e+00 : f32
    %270 = vector.broadcast %cst_101 : f32 to vector<16x32xf32>
    %cst_102 = arith.constant 0.000000e+00 : f32
    %271 = vector.broadcast %cst_102 : f32 to vector<16x32xf32>
    %c0_103 = arith.constant 0 : index
    %c0_104 = arith.constant 0 : index
    %272 = vector.load %arg10[%c0_103, %c0_104] : memref<128x32xbf16, #tpu.memory_space<vmem>>, vector<64x32xbf16>
    %c0_105 = arith.constant 0 : index
    %c0_106 = arith.constant 0 : index
    %273 = vector.load %arg4[%c0_105, %c0_106] : memref<32x128xbf16, #tpu.memory_space<vmem>>, vector<32x128xbf16>
    %cst_107 = arith.constant dense<0.000000e+00> : vector<64x128xf32>
    %274 = tpu.matmul %272, %273, %cst_107 {dimension_numbers = #tpu.dot_dimension_numbers<[1], [0], [0], [1], [0, 0, 1, 1], [], []>} : vector<64x32xbf16>, vector<32x128xbf16>, vector<64x128xf32> -> vector<64x128xf32>
    %c0_108 = arith.constant 0 : index
    %c0_109 = arith.constant 0 : index
    %275 = vector.load %arg6[%c0_108, %c0_109] : memref<1x128xf32, #tpu.memory_space<vmem>>, vector<1x128xf32>
    %276 = vector.broadcast %275 : vector<1x128xf32> to vector<64x128xf32>
    %277 = arith.addf %274, %276 : vector<64x128xf32>
    %c0_110 = arith.constant 0 : index
    %c0_111 = arith.constant 0 : index
    %278 = vector.load %arg11[%c0_110, %c0_111] : memref<64x128xf32, #tpu.memory_space<vmem>>, vector<64x128xf32>
    tpu.vector_store %arg11[%c0_110, %c0_111], %277 {strides = array<i32>} : memref<64x128xf32, #tpu.memory_space<vmem>>, vector<64x128xf32>,
    %c0_i32_112 = arith.constant 0 : i32
    %c16_i32_113 = arith.constant 16 : i32
    %279 = arith.muli %c0_i32_112, %c16_i32_113 : i32
    %280 = tpu.assume_multiple %279, 16 : i32
    %281 = arith.index_cast %280 : i32 to index
    %c0_114 = arith.constant 0 : index
    %282 = vector.load %arg11[%281, %c0_114] : memref<64x128xf32, #tpu.memory_space<vmem>>, vector<16x128xf32>
    %283 = arith.truncf %270 : vector<16x32xf32> to vector<16x32xbf16>
    %c0_115 = arith.constant 0 : index
    %c0_116 = arith.constant 0 : index
    %284 = vector.load %arg5[%c0_115, %c0_116] : memref<32x128xbf16, #tpu.memory_space<vmem>>, vector<32x128xbf16>
    %cst_117 = arith.constant dense<0.000000e+00> : vector<16x128xf32>
    %285 = tpu.matmul %283, %284, %cst_117 {dimension_numbers = #tpu.dot_dimension_numbers<[1], [0], [0], [1], [0, 0, 1, 1], [], []>} : vector<16x32xbf16>, vector<32x128xbf16>, vector<16x128xf32> -> vector<16x128xf32>
    %286 = arith.addf %282, %285 : vector<16x128xf32>
    %287 = arith.negf %286 : vector<16x128xf32>
    %288 = math.exp %287 : vector<16x128xf32>
    %cst_118 = arith.constant 1.000000e+00 : f32
    %289 = vector.broadcast %cst_118 : f32 to vector<16x128xf32>
    %290 = arith.addf %289, %288 : vector<16x128xf32>
    %291 = arith.divf %289, %290 : vector<16x128xf32>
    %cst_119 = arith.constant 2.000000e+00 : f32
    %292 = vector.broadcast %cst_119 : f32 to vector<16x128xf32>
    %293 = arith.mulf %292, %291 : vector<16x128xf32>
    %cst_120 = arith.constant 1.000000e+00 : f32
    %294 = vector.broadcast %cst_120 : f32 to vector<16x128xf32>
    %295 = arith.subf %293, %294 : vector<16x128xf32>
    %296 = arith.select %5, %295, %291 : vector<16x128xi1>, vector<16x128xf32>
    %297 = vector.extract_strided_slice %296 {offsets = [0, 0], sizes = [16, 32], strides = [1, 1]} : vector<16x128xf32> to vector<16x32xf32>
    %298 = vector.extract_strided_slice %296 {offsets = [0, 32], sizes = [16, 32], strides = [1, 1]} : vector<16x128xf32> to vector<16x32xf32>
    %299 = vector.extract_strided_slice %296 {offsets = [0, 64], sizes = [16, 32], strides = [1, 1]} : vector<16x128xf32> to vector<16x32xf32>
    %300 = vector.extract_strided_slice %296 {offsets = [0, 96], sizes = [16, 32], strides = [1, 1]} : vector<16x128xf32> to vector<16x32xf32>
    %301 = arith.mulf %298, %271 : vector<16x32xf32>
    %302 = arith.mulf %297, %299 : vector<16x32xf32>
    %303 = arith.addf %301, %302 : vector<16x32xf32>
    %304 = math.tanh %303 : vector<16x32xf32>
    %305 = arith.mulf %300, %304 : vector<16x32xf32>
    %306 = arith.truncf %305 : vector<16x32xf32> to vector<16x32xbf16>
    %c0_i32_121 = arith.constant 0 : i32
    %307 = arith.addi %c0_i32_121, %280 : i32
    %308 = arith.index_cast %307 : i32 to index
    %c0_122 = arith.constant 0 : index
    %309 = vector.load %arg10[%308, %c0_122] : memref<128x32xbf16, #tpu.memory_space<vmem>>, vector<16x32xbf16>
    tpu.vector_store %arg10[%308, %c0_122], %306 {strides = array<i32>} : memref<128x32xbf16, #tpu.memory_space<vmem>>, vector<16x32xbf16>,
    %c1_i32_123 = arith.constant 1 : i32
    %c16_i32_124 = arith.constant 16 : i32
    %310 = arith.muli %c1_i32_123, %c16_i32_124 : i32
    %311 = tpu.assume_multiple %310, 16 : i32
    %312 = arith.index_cast %311 : i32 to index
    %c0_125 = arith.constant 0 : index
    %313 = vector.load %arg11[%312, %c0_125] : memref<64x128xf32, #tpu.memory_space<vmem>>, vector<16x128xf32>
    %314 = arith.truncf %305 : vector<16x32xf32> to vector<16x32xbf16>
    %c0_126 = arith.constant 0 : index
    %c0_127 = arith.constant 0 : index
    %315 = vector.load %arg5[%c0_126, %c0_127] : memref<32x128xbf16, #tpu.memory_space<vmem>>, vector<32x128xbf16>
    %cst_128 = arith.constant dense<0.000000e+00> : vector<16x128xf32>
    %316 = tpu.matmul %314, %315, %cst_128 {dimension_numbers = #tpu.dot_dimension_numbers<[1], [0], [0], [1], [0, 0, 1, 1], [], []>} : vector<16x32xbf16>, vector<32x128xbf16>, vector<16x128xf32> -> vector<16x128xf32>
    %317 = arith.addf %313, %316 : vector<16x128xf32>
    %318 = arith.negf %317 : vector<16x128xf32>
    %319 = math.exp %318 : vector<16x128xf32>
    %cst_129 = arith.constant 1.000000e+00 : f32
    %320 = vector.broadcast %cst_129 : f32 to vector<16x128xf32>
    %321 = arith.addf %320, %319 : vector<16x128xf32>
    %322 = arith.divf %320, %321 : vector<16x128xf32>
    %cst_130 = arith.constant 2.000000e+00 : f32
    %323 = vector.broadcast %cst_130 : f32 to vector<16x128xf32>
    %324 = arith.mulf %323, %322 : vector<16x128xf32>
    %cst_131 = arith.constant 1.000000e+00 : f32
    %325 = vector.broadcast %cst_131 : f32 to vector<16x128xf32>
    %326 = arith.subf %324, %325 : vector<16x128xf32>
    %327 = arith.select %5, %326, %322 : vector<16x128xi1>, vector<16x128xf32>
    %328 = vector.extract_strided_slice %327 {offsets = [0, 0], sizes = [16, 32], strides = [1, 1]} : vector<16x128xf32> to vector<16x32xf32>
    %329 = vector.extract_strided_slice %327 {offsets = [0, 32], sizes = [16, 32], strides = [1, 1]} : vector<16x128xf32> to vector<16x32xf32>
    %330 = vector.extract_strided_slice %327 {offsets = [0, 64], sizes = [16, 32], strides = [1, 1]} : vector<16x128xf32> to vector<16x32xf32>
    %331 = vector.extract_strided_slice %327 {offsets = [0, 96], sizes = [16, 32], strides = [1, 1]} : vector<16x128xf32> to vector<16x32xf32>
    %332 = arith.mulf %329, %303 : vector<16x32xf32>
    %333 = arith.mulf %328, %330 : vector<16x32xf32>
    %334 = arith.addf %332, %333 : vector<16x32xf32>
    %335 = math.tanh %334 : vector<16x32xf32>
    %336 = arith.mulf %331, %335 : vector<16x32xf32>
    %337 = arith.truncf %336 : vector<16x32xf32> to vector<16x32xbf16>
    %c0_i32_132 = arith.constant 0 : i32
    %338 = arith.addi %c0_i32_132, %311 : i32
    %339 = arith.index_cast %338 : i32 to index
    %c0_133 = arith.constant 0 : index
    %340 = vector.load %arg10[%339, %c0_133] : memref<128x32xbf16, #tpu.memory_space<vmem>>, vector<16x32xbf16>
    tpu.vector_store %arg10[%339, %c0_133], %337 {strides = array<i32>} : memref<128x32xbf16, #tpu.memory_space<vmem>>, vector<16x32xbf16>,
    %c2_i32_134 = arith.constant 2 : i32
    %c16_i32_135 = arith.constant 16 : i32
    %341 = arith.muli %c2_i32_134, %c16_i32_135 : i32
    %342 = tpu.assume_multiple %341, 16 : i32
    %343 = arith.index_cast %342 : i32 to index
    %c0_136 = arith.constant 0 : index
    %344 = vector.load %arg11[%343, %c0_136] : memref<64x128xf32, #tpu.memory_space<vmem>>, vector<16x128xf32>
    %345 = arith.truncf %336 : vector<16x32xf32> to vector<16x32xbf16>
    %c0_137 = arith.constant 0 : index
    %c0_138 = arith.constant 0 : index
    %346 = vector.load %arg5[%c0_137, %c0_138] : memref<32x128xbf16, #tpu.memory_space<vmem>>, vector<32x128xbf16>
    %cst_139 = arith.constant dense<0.000000e+00> : vector<16x128xf32>
    %347 = tpu.matmul %345, %346, %cst_139 {dimension_numbers = #tpu.dot_dimension_numbers<[1], [0], [0], [1], [0, 0, 1, 1], [], []>} : vector<16x32xbf16>, vector<32x128xbf16>, vector<16x128xf32> -> vector<16x128xf32>
    %348 = arith.addf %344, %347 : vector<16x128xf32>
    %349 = arith.negf %348 : vector<16x128xf32>
    %350 = math.exp %349 : vector<16x128xf32>
    %cst_140 = arith.constant 1.000000e+00 : f32
    %351 = vector.broadcast %cst_140 : f32 to vector<16x128xf32>
    %352 = arith.addf %351, %350 : vector<16x128xf32>
    %353 = arith.divf %351, %352 : vector<16x128xf32>
    %cst_141 = arith.constant 2.000000e+00 : f32
    %354 = vector.broadcast %cst_141 : f32 to vector<16x128xf32>
    %355 = arith.mulf %354, %353 : vector<16x128xf32>
    %cst_142 = arith.constant 1.000000e+00 : f32
    %356 = vector.broadcast %cst_142 : f32 to vector<16x128xf32>
    %357 = arith.subf %355, %356 : vector<16x128xf32>
    %358 = arith.select %5, %357, %353 : vector<16x128xi1>, vector<16x128xf32>
    %359 = vector.extract_strided_slice %358 {offsets = [0, 0], sizes = [16, 32], strides = [1, 1]} : vector<16x128xf32> to vector<16x32xf32>
    %360 = vector.extract_strided_slice %358 {offsets = [0, 32], sizes = [16, 32], strides = [1, 1]} : vector<16x128xf32> to vector<16x32xf32>
    %361 = vector.extract_strided_slice %358 {offsets = [0, 64], sizes = [16, 32], strides = [1, 1]} : vector<16x128xf32> to vector<16x32xf32>
    %362 = vector.extract_strided_slice %358 {offsets = [0, 96], sizes = [16, 32], strides = [1, 1]} : vector<16x128xf32> to vector<16x32xf32>
    %363 = arith.mulf %360, %334 : vector<16x32xf32>
    %364 = arith.mulf %359, %361 : vector<16x32xf32>
    %365 = arith.addf %363, %364 : vector<16x32xf32>
    %366 = math.tanh %365 : vector<16x32xf32>
    %367 = arith.mulf %362, %366 : vector<16x32xf32>
    %368 = arith.truncf %367 : vector<16x32xf32> to vector<16x32xbf16>
    %c0_i32_143 = arith.constant 0 : i32
    %369 = arith.addi %c0_i32_143, %342 : i32
    %370 = arith.index_cast %369 : i32 to index
    %c0_144 = arith.constant 0 : index
    %371 = vector.load %arg10[%370, %c0_144] : memref<128x32xbf16, #tpu.memory_space<vmem>>, vector<16x32xbf16>
    tpu.vector_store %arg10[%370, %c0_144], %368 {strides = array<i32>} : memref<128x32xbf16, #tpu.memory_space<vmem>>, vector<16x32xbf16>,
    %c3_i32_145 = arith.constant 3 : i32
    %c16_i32_146 = arith.constant 16 : i32
    %372 = arith.muli %c3_i32_145, %c16_i32_146 : i32
    %373 = tpu.assume_multiple %372, 16 : i32
    %374 = arith.index_cast %373 : i32 to index
    %c0_147 = arith.constant 0 : index
    %375 = vector.load %arg11[%374, %c0_147] : memref<64x128xf32, #tpu.memory_space<vmem>>, vector<16x128xf32>
    %376 = arith.truncf %367 : vector<16x32xf32> to vector<16x32xbf16>
    %c0_148 = arith.constant 0 : index
    %c0_149 = arith.constant 0 : index
    %377 = vector.load %arg5[%c0_148, %c0_149] : memref<32x128xbf16, #tpu.memory_space<vmem>>, vector<32x128xbf16>
    %cst_150 = arith.constant dense<0.000000e+00> : vector<16x128xf32>
    %378 = tpu.matmul %376, %377, %cst_150 {dimension_numbers = #tpu.dot_dimension_numbers<[1], [0], [0], [1], [0, 0, 1, 1], [], []>} : vector<16x32xbf16>, vector<32x128xbf16>, vector<16x128xf32> -> vector<16x128xf32>
    %379 = arith.addf %375, %378 : vector<16x128xf32>
    %380 = arith.negf %379 : vector<16x128xf32>
    %381 = math.exp %380 : vector<16x128xf32>
    %cst_151 = arith.constant 1.000000e+00 : f32
    %382 = vector.broadcast %cst_151 : f32 to vector<16x128xf32>
    %383 = arith.addf %382, %381 : vector<16x128xf32>
    %384 = arith.divf %382, %383 : vector<16x128xf32>
    %cst_152 = arith.constant 2.000000e+00 : f32
    %385 = vector.broadcast %cst_152 : f32 to vector<16x128xf32>
    %386 = arith.mulf %385, %384 : vector<16x128xf32>
    %cst_153 = arith.constant 1.000000e+00 : f32
    %387 = vector.broadcast %cst_153 : f32 to vector<16x128xf32>
    %388 = arith.subf %386, %387 : vector<16x128xf32>
    %389 = arith.select %5, %388, %384 : vector<16x128xi1>, vector<16x128xf32>
    %390 = vector.extract_strided_slice %389 {offsets = [0, 0], sizes = [16, 32], strides = [1, 1]} : vector<16x128xf32> to vector<16x32xf32>
    %391 = vector.extract_strided_slice %389 {offsets = [0, 32], sizes = [16, 32], strides = [1, 1]} : vector<16x128xf32> to vector<16x32xf32>
    %392 = vector.extract_strided_slice %389 {offsets = [0, 64], sizes = [16, 32], strides = [1, 1]} : vector<16x128xf32> to vector<16x32xf32>
    %393 = vector.extract_strided_slice %389 {offsets = [0, 96], sizes = [16, 32], strides = [1, 1]} : vector<16x128xf32> to vector<16x32xf32>
    %394 = arith.mulf %391, %365 : vector<16x32xf32>
    %395 = arith.mulf %390, %392 : vector<16x32xf32>
    %396 = arith.addf %394, %395 : vector<16x32xf32>
    %397 = math.tanh %396 : vector<16x32xf32>
    %398 = arith.mulf %393, %397 : vector<16x32xf32>
    %399 = arith.truncf %398 : vector<16x32xf32> to vector<16x32xbf16>
    %c0_i32_154 = arith.constant 0 : i32
    %400 = arith.addi %c0_i32_154, %373 : i32
    %401 = arith.index_cast %400 : i32 to index
    %c0_155 = arith.constant 0 : index
    %402 = vector.load %arg10[%401, %c0_155] : memref<128x32xbf16, #tpu.memory_space<vmem>>, vector<16x32xbf16>
    tpu.vector_store %arg10[%401, %c0_155], %399 {strides = array<i32>} : memref<128x32xbf16, #tpu.memory_space<vmem>>, vector<16x32xbf16>,
    %c4_i32_156 = arith.constant 4 : i32
    %c64_157 = arith.constant 64 : index
    %c0_158 = arith.constant 0 : index
    %403 = vector.load %arg10[%c64_157, %c0_158] : memref<128x32xbf16, #tpu.memory_space<vmem>>, vector<64x32xbf16>
    %c0_159 = arith.constant 0 : index
    %c0_160 = arith.constant 0 : index
    %404 = vector.load %arg4[%c0_159, %c0_160] : memref<32x128xbf16, #tpu.memory_space<vmem>>, vector<32x128xbf16>
    %cst_161 = arith.constant dense<0.000000e+00> : vector<64x128xf32>
    %405 = tpu.matmul %403, %404, %cst_161 {dimension_numbers = #tpu.dot_dimension_numbers<[1], [0], [0], [1], [0, 0, 1, 1], [], []>} : vector<64x32xbf16>, vector<32x128xbf16>, vector<64x128xf32> -> vector<64x128xf32>
    %c0_162 = arith.constant 0 : index
    %c0_163 = arith.constant 0 : index
    %406 = vector.load %arg6[%c0_162, %c0_163] : memref<1x128xf32, #tpu.memory_space<vmem>>, vector<1x128xf32>
    %407 = vector.broadcast %406 : vector<1x128xf32> to vector<64x128xf32>
    %408 = arith.addf %405, %407 : vector<64x128xf32>
    %c0_164 = arith.constant 0 : index
    %c0_165 = arith.constant 0 : index
    %409 = vector.load %arg11[%c0_164, %c0_165] : memref<64x128xf32, #tpu.memory_space<vmem>>, vector<64x128xf32>
    tpu.vector_store %arg11[%c0_164, %c0_165], %408 {strides = array<i32>} : memref<64x128xf32, #tpu.memory_space<vmem>>, vector<64x128xf32>,
    %c0_i32_166 = arith.constant 0 : i32
    %c16_i32_167 = arith.constant 16 : i32
    %410 = arith.muli %c0_i32_166, %c16_i32_167 : i32
    %411 = tpu.assume_multiple %410, 16 : i32
    %412 = arith.index_cast %411 : i32 to index
    %c0_168 = arith.constant 0 : index
    %413 = vector.load %arg11[%412, %c0_168] : memref<64x128xf32, #tpu.memory_space<vmem>>, vector<16x128xf32>
    %414 = arith.truncf %398 : vector<16x32xf32> to vector<16x32xbf16>
    %c0_169 = arith.constant 0 : index
    %c0_170 = arith.constant 0 : index
    %415 = vector.load %arg5[%c0_169, %c0_170] : memref<32x128xbf16, #tpu.memory_space<vmem>>, vector<32x128xbf16>
    %cst_171 = arith.constant dense<0.000000e+00> : vector<16x128xf32>
    %416 = tpu.matmul %414, %415, %cst_171 {dimension_numbers = #tpu.dot_dimension_numbers<[1], [0], [0], [1], [0, 0, 1, 1], [], []>} : vector<16x32xbf16>, vector<32x128xbf16>, vector<16x128xf32> -> vector<16x128xf32>
    %417 = arith.addf %413, %416 : vector<16x128xf32>
    %418 = arith.negf %417 : vector<16x128xf32>
    %419 = math.exp %418 : vector<16x128xf32>
    %cst_172 = arith.constant 1.000000e+00 : f32
    %420 = vector.broadcast %cst_172 : f32 to vector<16x128xf32>
    %421 = arith.addf %420, %419 : vector<16x128xf32>
    %422 = arith.divf %420, %421 : vector<16x128xf32>
    %cst_173 = arith.constant 2.000000e+00 : f32
    %423 = vector.broadcast %cst_173 : f32 to vector<16x128xf32>
    %424 = arith.mulf %423, %422 : vector<16x128xf32>
    %cst_174 = arith.constant 1.000000e+00 : f32
    %425 = vector.broadcast %cst_174 : f32 to vector<16x128xf32>
    %426 = arith.subf %424, %425 : vector<16x128xf32>
    %427 = arith.select %5, %426, %422 : vector<16x128xi1>, vector<16x128xf32>
    %428 = vector.extract_strided_slice %427 {offsets = [0, 0], sizes = [16, 32], strides = [1, 1]} : vector<16x128xf32> to vector<16x32xf32>
    %429 = vector.extract_strided_slice %427 {offsets = [0, 32], sizes = [16, 32], strides = [1, 1]} : vector<16x128xf32> to vector<16x32xf32>
    %430 = vector.extract_strided_slice %427 {offsets = [0, 64], sizes = [16, 32], strides = [1, 1]} : vector<16x128xf32> to vector<16x32xf32>
    %431 = vector.extract_strided_slice %427 {offsets = [0, 96], sizes = [16, 32], strides = [1, 1]} : vector<16x128xf32> to vector<16x32xf32>
    %432 = arith.mulf %429, %396 : vector<16x32xf32>
    %433 = arith.mulf %428, %430 : vector<16x32xf32>
    %434 = arith.addf %432, %433 : vector<16x32xf32>
    %435 = math.tanh %434 : vector<16x32xf32>
    %436 = arith.mulf %431, %435 : vector<16x32xf32>
    %437 = arith.truncf %436 : vector<16x32xf32> to vector<16x32xbf16>
    %c64_i32_175 = arith.constant 64 : i32
    %438 = arith.addi %c64_i32_175, %411 : i32
    %439 = arith.index_cast %438 : i32 to index
    %c0_176 = arith.constant 0 : index
    %440 = vector.load %arg10[%439, %c0_176] : memref<128x32xbf16, #tpu.memory_space<vmem>>, vector<16x32xbf16>
    tpu.vector_store %arg10[%439, %c0_176], %437 {strides = array<i32>} : memref<128x32xbf16, #tpu.memory_space<vmem>>, vector<16x32xbf16>,
    %c1_i32_177 = arith.constant 1 : i32
    %c16_i32_178 = arith.constant 16 : i32
    %441 = arith.muli %c1_i32_177, %c16_i32_178 : i32
    %442 = tpu.assume_multiple %441, 16 : i32
    %443 = arith.index_cast %442 : i32 to index
    %c0_179 = arith.constant 0 : index
    %444 = vector.load %arg11[%443, %c0_179] : memref<64x128xf32, #tpu.memory_space<vmem>>, vector<16x128xf32>
    %445 = arith.truncf %436 : vector<16x32xf32> to vector<16x32xbf16>
    %c0_180 = arith.constant 0 : index
    %c0_181 = arith.constant 0 : index
    %446 = vector.load %arg5[%c0_180, %c0_181] : memref<32x128xbf16, #tpu.memory_space<vmem>>, vector<32x128xbf16>
    %cst_182 = arith.constant dense<0.000000e+00> : vector<16x128xf32>
    %447 = tpu.matmul %445, %446, %cst_182 {dimension_numbers = #tpu.dot_dimension_numbers<[1], [0], [0], [1], [0, 0, 1, 1], [], []>} : vector<16x32xbf16>, vector<32x128xbf16>, vector<16x128xf32> -> vector<16x128xf32>
    %448 = arith.addf %444, %447 : vector<16x128xf32>
    %449 = arith.negf %448 : vector<16x128xf32>
    %450 = math.exp %449 : vector<16x128xf32>
    %cst_183 = arith.constant 1.000000e+00 : f32
    %451 = vector.broadcast %cst_183 : f32 to vector<16x128xf32>
    %452 = arith.addf %451, %450 : vector<16x128xf32>
    %453 = arith.divf %451, %452 : vector<16x128xf32>
    %cst_184 = arith.constant 2.000000e+00 : f32
    %454 = vector.broadcast %cst_184 : f32 to vector<16x128xf32>
    %455 = arith.mulf %454, %453 : vector<16x128xf32>
    %cst_185 = arith.constant 1.000000e+00 : f32
    %456 = vector.broadcast %cst_185 : f32 to vector<16x128xf32>
    %457 = arith.subf %455, %456 : vector<16x128xf32>
    %458 = arith.select %5, %457, %453 : vector<16x128xi1>, vector<16x128xf32>
    %459 = vector.extract_strided_slice %458 {offsets = [0, 0], sizes = [16, 32], strides = [1, 1]} : vector<16x128xf32> to vector<16x32xf32>
    %460 = vector.extract_strided_slice %458 {offsets = [0, 32], sizes = [16, 32], strides = [1, 1]} : vector<16x128xf32> to vector<16x32xf32>
    %461 = vector.extract_strided_slice %458 {offsets = [0, 64], sizes = [16, 32], strides = [1, 1]} : vector<16x128xf32> to vector<16x32xf32>
    %462 = vector.extract_strided_slice %458 {offsets = [0, 96], sizes = [16, 32], strides = [1, 1]} : vector<16x128xf32> to vector<16x32xf32>
    %463 = arith.mulf %460, %434 : vector<16x32xf32>
    %464 = arith.mulf %459, %461 : vector<16x32xf32>
    %465 = arith.addf %463, %464 : vector<16x32xf32>
    %466 = math.tanh %465 : vector<16x32xf32>
    %467 = arith.mulf %462, %466 : vector<16x32xf32>
    %468 = arith.truncf %467 : vector<16x32xf32> to vector<16x32xbf16>
    %c64_i32_186 = arith.constant 64 : i32
    %469 = arith.addi %c64_i32_186, %442 : i32
    %470 = arith.index_cast %469 : i32 to index
    %c0_187 = arith.constant 0 : index
    %471 = vector.load %arg10[%470, %c0_187] : memref<128x32xbf16, #tpu.memory_space<vmem>>, vector<16x32xbf16>
    tpu.vector_store %arg10[%470, %c0_187], %468 {strides = array<i32>} : memref<128x32xbf16, #tpu.memory_space<vmem>>, vector<16x32xbf16>,
    %c2_i32_188 = arith.constant 2 : i32
    %c16_i32_189 = arith.constant 16 : i32
    %472 = arith.muli %c2_i32_188, %c16_i32_189 : i32
    %473 = tpu.assume_multiple %472, 16 : i32
    %474 = arith.index_cast %473 : i32 to index
    %c0_190 = arith.constant 0 : index
    %475 = vector.load %arg11[%474, %c0_190] : memref<64x128xf32, #tpu.memory_space<vmem>>, vector<16x128xf32>
    %476 = arith.truncf %467 : vector<16x32xf32> to vector<16x32xbf16>
    %c0_191 = arith.constant 0 : index
    %c0_192 = arith.constant 0 : index
    %477 = vector.load %arg5[%c0_191, %c0_192] : memref<32x128xbf16, #tpu.memory_space<vmem>>, vector<32x128xbf16>
    %cst_193 = arith.constant dense<0.000000e+00> : vector<16x128xf32>
    %478 = tpu.matmul %476, %477, %cst_193 {dimension_numbers = #tpu.dot_dimension_numbers<[1], [0], [0], [1], [0, 0, 1, 1], [], []>} : vector<16x32xbf16>, vector<32x128xbf16>, vector<16x128xf32> -> vector<16x128xf32>
    %479 = arith.addf %475, %478 : vector<16x128xf32>
    %480 = arith.negf %479 : vector<16x128xf32>
    %481 = math.exp %480 : vector<16x128xf32>
    %cst_194 = arith.constant 1.000000e+00 : f32
    %482 = vector.broadcast %cst_194 : f32 to vector<16x128xf32>
    %483 = arith.addf %482, %481 : vector<16x128xf32>
    %484 = arith.divf %482, %483 : vector<16x128xf32>
    %cst_195 = arith.constant 2.000000e+00 : f32
    %485 = vector.broadcast %cst_195 : f32 to vector<16x128xf32>
    %486 = arith.mulf %485, %484 : vector<16x128xf32>
    %cst_196 = arith.constant 1.000000e+00 : f32
    %487 = vector.broadcast %cst_196 : f32 to vector<16x128xf32>
    %488 = arith.subf %486, %487 : vector<16x128xf32>
    %489 = arith.select %5, %488, %484 : vector<16x128xi1>, vector<16x128xf32>
    %490 = vector.extract_strided_slice %489 {offsets = [0, 0], sizes = [16, 32], strides = [1, 1]} : vector<16x128xf32> to vector<16x32xf32>
    %491 = vector.extract_strided_slice %489 {offsets = [0, 32], sizes = [16, 32], strides = [1, 1]} : vector<16x128xf32> to vector<16x32xf32>
    %492 = vector.extract_strided_slice %489 {offsets = [0, 64], sizes = [16, 32], strides = [1, 1]} : vector<16x128xf32> to vector<16x32xf32>
    %493 = vector.extract_strided_slice %489 {offsets = [0, 96], sizes = [16, 32], strides = [1, 1]} : vector<16x128xf32> to vector<16x32xf32>
    %494 = arith.mulf %491, %465 : vector<16x32xf32>
    %495 = arith.mulf %490, %492 : vector<16x32xf32>
    %496 = arith.addf %494, %495 : vector<16x32xf32>
    %497 = math.tanh %496 : vector<16x32xf32>
    %498 = arith.mulf %493, %497 : vector<16x32xf32>
    %499 = arith.truncf %498 : vector<16x32xf32> to vector<16x32xbf16>
    %c64_i32_197 = arith.constant 64 : i32
    %500 = arith.addi %c64_i32_197, %473 : i32
    %501 = arith.index_cast %500 : i32 to index
    %c0_198 = arith.constant 0 : index
    %502 = vector.load %arg10[%501, %c0_198] : memref<128x32xbf16, #tpu.memory_space<vmem>>, vector<16x32xbf16>
    tpu.vector_store %arg10[%501, %c0_198], %499 {strides = array<i32>} : memref<128x32xbf16, #tpu.memory_space<vmem>>, vector<16x32xbf16>,
    %c3_i32_199 = arith.constant 3 : i32
    %c16_i32_200 = arith.constant 16 : i32
    %503 = arith.muli %c3_i32_199, %c16_i32_200 : i32
    %504 = tpu.assume_multiple %503, 16 : i32
    %505 = arith.index_cast %504 : i32 to index
    %c0_201 = arith.constant 0 : index
    %506 = vector.load %arg11[%505, %c0_201] : memref<64x128xf32, #tpu.memory_space<vmem>>, vector<16x128xf32>
    %507 = arith.truncf %498 : vector<16x32xf32> to vector<16x32xbf16>
    %c0_202 = arith.constant 0 : index
    %c0_203 = arith.constant 0 : index
    %508 = vector.load %arg5[%c0_202, %c0_203] : memref<32x128xbf16, #tpu.memory_space<vmem>>, vector<32x128xbf16>
    %cst_204 = arith.constant dense<0.000000e+00> : vector<16x128xf32>
    %509 = tpu.matmul %507, %508, %cst_204 {dimension_numbers = #tpu.dot_dimension_numbers<[1], [0], [0], [1], [0, 0, 1, 1], [], []>} : vector<16x32xbf16>, vector<32x128xbf16>, vector<16x128xf32> -> vector<16x128xf32>
    %510 = arith.addf %506, %509 : vector<16x128xf32>
    %511 = arith.negf %510 : vector<16x128xf32>
    %512 = math.exp %511 : vector<16x128xf32>
    %cst_205 = arith.constant 1.000000e+00 : f32
    %513 = vector.broadcast %cst_205 : f32 to vector<16x128xf32>
    %514 = arith.addf %513, %512 : vector<16x128xf32>
    %515 = arith.divf %513, %514 : vector<16x128xf32>
    %cst_206 = arith.constant 2.000000e+00 : f32
    %516 = vector.broadcast %cst_206 : f32 to vector<16x128xf32>
    %517 = arith.mulf %516, %515 : vector<16x128xf32>
    %cst_207 = arith.constant 1.000000e+00 : f32
    %518 = vector.broadcast %cst_207 : f32 to vector<16x128xf32>
    %519 = arith.subf %517, %518 : vector<16x128xf32>
    %520 = arith.select %5, %519, %515 : vector<16x128xi1>, vector<16x128xf32>
    %521 = vector.extract_strided_slice %520 {offsets = [0, 0], sizes = [16, 32], strides = [1, 1]} : vector<16x128xf32> to vector<16x32xf32>
    %522 = vector.extract_strided_slice %520 {offsets = [0, 32], sizes = [16, 32], strides = [1, 1]} : vector<16x128xf32> to vector<16x32xf32>
    %523 = vector.extract_strided_slice %520 {offsets = [0, 64], sizes = [16, 32], strides = [1, 1]} : vector<16x128xf32> to vector<16x32xf32>
    %524 = vector.extract_strided_slice %520 {offsets = [0, 96], sizes = [16, 32], strides = [1, 1]} : vector<16x128xf32> to vector<16x32xf32>
    %525 = arith.mulf %522, %496 : vector<16x32xf32>
    %526 = arith.mulf %521, %523 : vector<16x32xf32>
    %527 = arith.addf %525, %526 : vector<16x32xf32>
    %528 = math.tanh %527 : vector<16x32xf32>
    %529 = arith.mulf %524, %528 : vector<16x32xf32>
    %530 = arith.truncf %529 : vector<16x32xf32> to vector<16x32xbf16>
    %c64_i32_208 = arith.constant 64 : i32
    %531 = arith.addi %c64_i32_208, %504 : i32
    %532 = arith.index_cast %531 : i32 to index
    %c0_209 = arith.constant 0 : index
    %533 = vector.load %arg10[%532, %c0_209] : memref<128x32xbf16, #tpu.memory_space<vmem>>, vector<16x32xbf16>
    tpu.vector_store %arg10[%532, %c0_209], %530 {strides = array<i32>} : memref<128x32xbf16, #tpu.memory_space<vmem>>, vector<16x32xbf16>,
    %c4_i32_210 = arith.constant 4 : i32
    %c0_211 = arith.constant 0 : index
    %c0_212 = arith.constant 0 : index
    %534 = vector.load %arg10[%c0_211, %c0_212] : memref<128x32xbf16, #tpu.memory_space<vmem>>, vector<128x32xbf16>
    %c0_213 = arith.constant 0 : index
    %c0_214 = arith.constant 0 : index
    %535 = vector.load %arg7[%c0_213, %c0_214] : memref<32x128xbf16, #tpu.memory_space<vmem>>, vector<32x128xbf16>
    %cst_215 = arith.constant dense<0.000000e+00> : vector<128x128xf32>
    %536 = tpu.matmul %534, %535, %cst_215 {dimension_numbers = #tpu.dot_dimension_numbers<[1], [0], [0], [1], [0, 0, 1, 1], [], []>} : vector<128x32xbf16>, vector<32x128xbf16>, vector<128x128xf32> -> vector<128x128xf32>
    %c0_216 = arith.constant 0 : index
    %c0_217 = arith.constant 0 : index
    %537 = vector.load %arg8[%c0_216, %c0_217] : memref<1x128xf32, #tpu.memory_space<vmem>>, vector<1x128xf32>
    %538 = vector.broadcast %537 : vector<1x128xf32> to vector<128x128xf32>
    %539 = arith.addf %536, %538 : vector<128x128xf32>
    %c0_218 = arith.constant 0 : index
    %c0_219 = arith.constant 0 : index
    %540 = vector.load %arg9[%c0_218, %c0_219] : memref<128x128xf32, #tpu.memory_space<vmem>>, vector<128x128xf32>
    tpu.vector_store %arg9[%c0_218, %c0_219], %539 {strides = array<i32>} : memref<128x128xf32, #tpu.memory_space<vmem>>, vector<128x128xf32>,
    return
  }
}

</mosaic_0001>

<bundles_post_ra>
// kernel: tpu_custom_call.1
= control target key start
LH: loop header
LB: loop body
LE: loop exit
PB: predicated region body
PF: predicated region fallthrough
CT: control target
= control target key end

     0   :  { %vm82_vm0 = vcmask 130048   ;;  %v3388_v3 = vmov 0.0   ;;  %vm3389_vm1 = vmmov 0   ;;  %v3390_v8 = vmov 0   ;;  %s4112_s0 = inlined_call_operand.vmem [shape: bf16[128,16], index: 0, kind: input, shape index: {}]   ;;  %s4113_s1 = inlined_call_operand.vmem [shape: bf16[16,128], index: 1, kind: input, shape index: {}]   ;;  %s4114_s2 = inlined_call_operand.vmem [shape: bf16[32,128], index: 2, kind: input, shape index: {}]   ;;  %s4115_s3 = inlined_call_operand.vmem [shape: f32[1,128], index: 3, kind: input, shape index: {}]   ;;  %s4116_s4 = inlined_call_operand.vmem [shape: bf16[32,128], index: 4, kind: input, shape index: {}]   ;;  %s4117_s5 = inlined_call_operand.vmem [shape: bf16[32,128], index: 5, kind: input, shape index: {}]   ;;  %s4118_s6 = inlined_call_operand.vmem [shape: f32[1,128], index: 6, kind: input, shape index: {}]   ;;  %s4119_s7 = inlined_call_operand.vmem [shape: bf16[32,128], index: 7, kind: input, shape index: {}]   ;;  %s4120_s8 = inlined_call_operand.vmem [shape: f32[1,128], index: 8, kind: input, shape index: {}]   ;;  %s4121_s9 = inlined_call_operand.hbm [shape: f32[128,128], index: 9, kind: output, shape index: {}]  }
   0x1   :  { %v3123_v0 = vld [vmem:[%s4113_s1] sm:$0xff]   ;;  %v3125_v2 = vld [vmem:[%s4112_s0 + $0x8] sm:$0xff]   ;;  %2949 = vmatprep.subr.bf16.mxu0 %v3388_v3  ;;  %v3127_v5 = vld [vmem:[%s4112_s0 + $0x10] sm:$0xff]   ;;  %2953 = vmatprep.mubr.msk.bf16.mxu0 %vm3389_vm1, %v3388_v3 }
   0x2   :  { %v3124_v1 = vld [vmem:[%s4112_s0] sm:$0xff]   ;;  %2923 = vmatprep.subr.bf16.mxu1 %v3123_v0  ;;  %v3129_v6 = vld [vmem:[%s4114_s2 + $0x8] sm:$0xff]   ;;  %v3128_v7 = vld [vmem:[%s4112_s0 + $0x18] sm:$0xff]  }
   0x3   :  { %2924 = vmatpush3.bf16.msra.mxu1 %v3123_v0  ;;  %2925 = vmatprep.mubr.msk.bf16.mxu1 %vm82_vm0, %v3124_v1  ;;  %v3126_v4 = vld [vmem:[%s4114_s2] sm:$0xff]  }
   0x4   :  { %2933 = vmatprep.subr.bf16.mxu1 %v3388_v3 }
   0x6   :  { %2926 = vmatmul.mubr.msk.bf16.vlgmr.msra.gmra.mrb[0].mxu1 %vm82_vm0, %v3125_v2 }
   0x7   :  { %2934 = vmatpush3.bf16.msra.mxu1 %v3126_v4  ;;  %2929 = vmatprep.mubr.msk.bf16.mxu1 %vm82_vm0, %v3127_v5 }
   0x8   :  { %2935 = vmatprep.subr.bf16.mxu1 %v3388_v3 }
   0xb   :  { %2936 = vmatpush3.bf16.msra.mxu1 %v3129_v6 }
   0xc   :  { %2941 = vmatprep.subr.bf16.mxu1 %v3388_v3 }
   0xe   :  { %2930 = vmatmul.mubr.msk.bf16.gmra.mrb[4].mxu1 %vm82_vm0, %v3128_v7 }
   0xf   :  { %2937 = vmatprep.mubr.msk.bf16.mxu1 %vm3389_vm1, %v3388_v3 }
  0x16   :  { %2938 = vmatmul.mubr.bf16.vlgmr.msra.gmra.mrb[8].mxu1 %v3390_v8 }
  0x17   :  { %2945 = vmatprep.mubr.msk.bf16.mxu1 %vm3389_vm1, %v3388_v3 }
  0x18   :  { %14 = vsyncpa [#allocation5], 0  ;;  %v3497_v17 = vld [vmem:[%s4115_s3] ss:$0 sm:$0xff]  ;;  %v34_v32 = vlaneseq  ;;  %s3391_s3 = smov 64   ;;  %s3392_s25 = smov 32  }
  0x19   :  { %v3130_v53 = vld [vmem:[%s4114_s2] sm:$0xff]   ;;  %v3131_v54 = vld [vmem:[%s4114_s2 + $0x8] sm:$0xff]   ;;  %vm186_vm5 = vcmask 261120  }
  0x1a   :  { %v35_v33 = vand.u32 127, %v34_v32  ;;  %2942 = vmatpush3.bf16.msra.mxu1 %v3130_v53 }
  0x1b   :  { %2943 = vmatprep.subr.bf16.mxu1 %v3388_v3 }
  0x1c   :  { %vm36_vm2 = vcmp.ge.s32.totalorder %v35_v33, 64  ;;  %vm37_vm3 = vcmp.lt.s32.totalorder %v35_v33, 96 }
  0x1d   :  { %vm3501_vm4 = vmand %vm36_vm2, %vm37_vm3 }
  0x1e   :  { %2944 = vmatpush3.bf16.msra.mxu1 %v3131_v54 }
  0x1f   :  { %2957 = vmatprep.subr.bf16.mxu1 %v3388_v3 }
  0xd9   :  { %v3482_v9 = vpop.f32.mrb[0].mxu1 }
  0xda   :  { %v129_v10 = vpop.f32.mrb[1].mxu1  ;;  %v138_v63 = vadd.f32 %v3482_v9, %v3497_v17 }
  0xdb   :  { %v3484_v11 = vpop.f32.mrb[2].mxu1  ;;  %v130_v18 = vadd.f32 %v3497_v17, %v129_v10 }
  0xdc   :  { %v132_v12 = vpop.f32.mrb[3].mxu1  ;;  %v141_v1 = vadd.f32 %v3484_v11, %v3497_v17 }
  0xdd   :  { %v133_v20 = vadd.f32 %v3497_v17, %v132_v12 }
  0xe1   :  { %v3486_v13 = vpop.f32.mrb[4].mxu1 }
  0xe2   :  { %v3488_v14 = vpop.f32.mrb[5].mxu1 }
  0xe3   :  { %v3490_v15 = vpop.f32.mrb[6].mxu1 }
  0xe4   :  { %v3492_v16 = vpop.f32.mrb[7].mxu1 }
  0xe9   :  { %v224_v19 = vpop.f32.mrb[8].mxu1 }
  0xea   :  { %v231_v21 = vadd.f32 %v224_v19, %v130_v18  ;;  %v2939_v22 = vpop.f32.mrb[9].mxu1 }
  0xeb   :  { %v227_v23 = vpop.f32.mrb[10].mxu1 }
  0xec   :  { %v2700_v24 = vmul.f32 -1.442695, %v231_v21  ;;  %v232_v25 = vadd.f32 %v227_v23, %v133_v20  ;;  %v2940_v26 = vpop.f32.mrb[11].mxu1 }
  0xee   :  { %3171 = vpow2.f32 %v2700_v24  ;;  %v2701_v27 = vmul.f32 -1.442695, %v232_v25 }
  0xf0   :  { %3173 = vpow2.f32 %v2701_v27 }
  0xf8   :  { %v3172_v28 = vpop.eup %3171 }
  0xf9   :  { %v239_v29 = vadd.f32 1.0, %v3172_v28 }
  0xfa   :  { %v3174_v30 = vpop.eup %3173 }
  0xfb   :  { %3175 = vrcp.f32 %v239_v29  ;;  %v240_v31 = vadd.f32 1.0, %v3174_v30 }
  0xfd   :  { %3177 = vrcp.f32 %v240_v31 }
 0x105   :  { %v3176_v34 = vpop.eup %3175 }
 0x106   :  { %v245_v35 = vmul.f32 2.0, %v3176_v34 }
 0x107   :  { %v3178_v36 = vpop.eup %3177 }
 0x108   :  { %v2702_v38 = vadd.f32 -1.0, %v245_v35  ;;  %v246_v39 = vmul.f32 2.0, %v3178_v36 }
 0x10a   :  { %v249_v40 = vsel %vm3501_vm4, %v2702_v38, %v3176_v34  ;;  %v2703_v41 = vadd.f32 -1.0, %v246_v39  ;;  %v3132_v39 = vld [vmem:[%s4114_s2] sm:$0xff]  }
 0x10b   :  { %255 = vrot.lane.b32.xlu0 %v249_v40, %s3391_s3  ;;  %v251_v47 = vmul.f32 0.0, %v249_v40  ;;  %2950 = vmatpush3.bf16.msra.mxu0 %v3132_v39 }
 0x10c   :  { %v250_v42 = vsel %vm3501_vm4, %v2703_v41, %v3178_v36  ;;  %2951 = vmatprep.subr.bf16.mxu0 %v3388_v3 }
 0x10d   :  { %v252_v50 = vmul.f32 0.0, %v250_v42 }
 0x10f   :  { %257 = vrot.lane.b32.xlu0 %v250_v42, %s3391_s3 }
 0x17d   :  { %v256_v43 = vpop.permute.xlu0 %255 }
 0x17e   :  { %v261_v44 = vmul.f32 %v256_v43, %v249_v40 }
 0x180   :  { %265 = vrot.lane.b32.xlu1 %v261_v44, %s3392_s25 }
 0x181   :  { %v258_v45 = vpop.permute.xlu0 %257 }
 0x182   :  { %v262_v46 = vmul.f32 %v258_v45, %v250_v42 }
 0x184   :  { %267 = vrot.lane.b32.xlu1 %v262_v46, %s3392_s25 }
 0x1f2   :  { %v266_v48 = vpop.permute.xlu1 %265 }
 0x1f3   :  { %v271_v49 = vadd.f32 %v266_v48, %v251_v47 }
 0x1f5   :  { %3179 = vtanh.f32 %v271_v49 }
 0x1f6   :  { %v268_v51 = vpop.permute.xlu1 %267 }
 0x1f7   :  { %v272_v52 = vadd.f32 %v268_v51, %v252_v50  ;;  %v149_v51 = vadd.f32 %v3497_v17, %v3492_v16 }
 0x1f9   :  { %3181 = vtanh.f32 %v272_v52 }
 0x1ff   :  { %v3180_v55 = vpop.eup %3179 }
 0x200   :  { %277 = vrot.lane.b32.xlu0 %v3180_v55, %s3391_s3 }
 0x203   :  { %v3182_v56 = vpop.eup %3181 }
 0x204   :  { %279 = vrot.lane.b32.xlu1 %v3182_v56, %s3391_s3 }
 0x272   :  { %v278_v57 = vpop.permute.xlu0 %277 }
 0x273   :  { %v283_v59 = vmul.f32 %v278_v57, %v249_v40  ;;  %v3133_v40 = vld [vmem:[%s4114_s2 + $0x8] sm:$0xff]  }
 0x274   :  { %2952 = vmatpush3.bf16.msra.mxu0 %v3133_v40 }
 0x276   :  { %v280_v58 = vpop.permute.xlu1 %279 }
 0x277   :  { %v284_v60 = vmul.f32 %v280_v58, %v250_v42 }
 0x279   :  { %v285_v61 = vpack.c.bf16 %v284_v60, %v283_v59 }
 0x27b   :  { %287 = vrot.lane.b32.xlu0 %v285_v61, %s3392_s25 }
 0x2ed   :  { %v288_v62 = vpop.permute.xlu0 %287 }
 0x2ee   :  { %290 = vst.msk [vmem:[#allocation2] sm:$0xff] %vm186_vm5, %v288_v62  ;;  %2946 = vmatmul.mubr.msk.bf16.vlgmr.msra.gmra.mrb[12].mxu1 %vm186_vm5, %v288_v62 }
 0x2ef   :  { %2961 = vmatprep.mubr.msk.bf16.mxu1 %vm3389_vm1, %v3388_v3 }
 0x3c1   :  { %v347_v0 = vpop.f32.mrb[12].mxu1 }
 0x3c2   :  { %v354_v2 = vadd.f32 %v347_v0, %v138_v63  ;;  %v2947_v4 = vpop.f32.mrb[13].mxu1 }
 0x3c3   :  { %v350_v5 = vpop.f32.mrb[14].mxu1 }
 0x3c4   :  { %v2707_v6 = vmul.f32 -1.442695, %v354_v2  ;;  %v355_v7 = vadd.f32 %v350_v5, %v141_v1  ;;  %v2948_v10 = vpop.f32.mrb[15].mxu1 }
 0x3c6   :  { %3183 = vpow2.f32 %v2707_v6  ;;  %v2708_v12 = vmul.f32 -1.442695, %v355_v7 }
 0x3c8   :  { %3185 = vpow2.f32 %v2708_v12 }
 0x3d0   :  { %v3184_v18 = vpop.eup %3183 }
 0x3d1   :  { %v362_v19 = vadd.f32 1.0, %v3184_v18 }
 0x3d2   :  { %v3186_v20 = vpop.eup %3185 }
 0x3d3   :  { %3187 = vrcp.f32 %v362_v19  ;;  %v363_v21 = vadd.f32 1.0, %v3186_v20 }
 0x3d5   :  { %3189 = vrcp.f32 %v363_v21 }
 0x3dd   :  { %v3188_v9 = vpop.eup %3187 }
 0x3de   :  { %v368_v22 = vmul.f32 2.0, %v3188_v9 }
 0x3df   :  { %v3190_v23 = vpop.eup %3189 }
 0x3e0   :  { %v2709_v24 = vadd.f32 -1.0, %v368_v22  ;;  %v369_v11 = vmul.f32 2.0, %v3190_v23 }
 0x3e2   :  { %v372_v25 = vsel %vm3501_vm4, %v2709_v24, %v3188_v9  ;;  %v2710_v26 = vadd.f32 -1.0, %v369_v11  ;;  %v3135_v24 = vld [vmem:[%s4114_s2 + $0x8] sm:$0xff]  }
 0x3e3   :  { %378 = vrot.lane.b32.xlu1 %v372_v25, %s3391_s3  ;;  %v374_v32 = vmul.f32 %v372_v25, %v271_v49  ;;  %v146_v49 = vadd.f32 %v3497_v17, %v3488_v14 }
 0x3e4   :  { %v373_v27 = vsel %vm3501_vm4, %v2710_v26, %v3190_v23  ;;  %v3134_v23 = vld [vmem:[%s4114_s2] sm:$0xff]  }
 0x3e5   :  { %380 = vrot.lane.b32.xlu0 %v373_v27, %s3391_s3  ;;  %v375_v35 = vmul.f32 %v373_v27, %v272_v52  ;;  %2958 = vmatpush3.bf16.msra.mxu1 %v3134_v23 }
 0x3e6   :  { %2959 = vmatprep.subr.bf16.mxu1 %v3388_v3 }
 0x3e9   :  { %2960 = vmatpush3.bf16.msra.mxu1 %v3135_v24 }
 0x3ea   :  { %2975 = vmatprep.subr.bf16.mxu1 %v3388_v3 }
 0x455   :  { %v379_v28 = vpop.permute.xlu1 %378 }
 0x456   :  { %v384_v29 = vmul.f32 %v379_v28, %v372_v25 }
 0x457   :  { %v381_v30 = vpop.permute.xlu0 %380 }
 0x458   :  { %v385_v31 = vmul.f32 %v381_v30, %v373_v27  ;;  %388 = vrot.lane.b32.xlu1 %v384_v29, %s3392_s25 }
 0x45a   :  { %390 = vrot.lane.b32.xlu0 %v385_v31, %s3392_s25 }
 0x4ca   :  { %v389_v33 = vpop.permute.xlu1 %388 }
 0x4cb   :  { %v394_v34 = vadd.f32 %v389_v33, %v374_v32  ;;  %v154_v32 = vadd.f32 %v3486_v13, %v3497_v17 }
 0x4cc   :  { %v391_v36 = vpop.permute.xlu0 %390 }
 0x4cd   :  { %3191 = vtanh.f32 %v394_v34  ;;  %v395_v38 = vadd.f32 %v391_v36, %v375_v35 }
 0x4cf   :  { %3193 = vtanh.f32 %v395_v38 }
 0x4d7   :  { %v3192_v41 = vpop.eup %3191 }
 0x4d8   :  { %400 = vrot.lane.b32.xlu1 %v3192_v41, %s3391_s3 }
 0x4d9   :  { %v3194_v42 = vpop.eup %3193 }
 0x4da   :  { %402 = vrot.lane.b32.xlu0 %v3194_v42, %s3391_s3 }
 0x54a   :  { %v401_v43 = vpop.permute.xlu1 %400 }
 0x54b   :  { %v406_v45 = vmul.f32 %v401_v43, %v372_v25 }
 0x54c   :  { %v403_v44 = vpop.permute.xlu0 %402 }
 0x54d   :  { %v407_v46 = vmul.f32 %v403_v44, %v373_v27 }
 0x54f   :  { %v408_v47 = vpack.c.bf16 %v407_v46, %v406_v45 }
 0x551   :  { %410 = vrot.lane.b32.xlu1 %v408_v47, %s3392_s25 }
 0x5c3   :  { %v411_v48 = vpop.permute.xlu1 %410 }
 0x5c4   :  { %414 = vst.msk [vmem:[#allocation2 + $0x8] sm:$0xff] %vm186_vm5, %v411_v48  ;;  %2954 = vmatmul.mubr.msk.bf16.vlgmr.msra.gmra.mrb[0].mxu0 %vm186_vm5, %v411_v48 }
 0x697   :  { %v471_v50 = vpop.f32.mrb[0].mxu0 }
 0x698   :  { %v478_v52 = vadd.f32 %v471_v50, %v146_v49  ;;  %v2955_v53 = vpop.f32.mrb[1].mxu0 }
 0x699   :  { %v474_v54 = vpop.f32.mrb[2].mxu0 }
 0x69a   :  { %v2714_v55 = vmul.f32 -1.442695, %v478_v52  ;;  %v479_v56 = vadd.f32 %v474_v54, %v149_v51  ;;  %v2956_v57 = vpop.f32.mrb[3].mxu0 }
 0x69c   :  { %3195 = vpow2.f32 %v2714_v55  ;;  %v2715_v58 = vmul.f32 -1.442695, %v479_v56 }
 0x69e   :  { %3197 = vpow2.f32 %v2715_v58 }
 0x6a6   :  { %v3196_v59 = vpop.eup %3195 }
 0x6a7   :  { %v486_v60 = vadd.f32 1.0, %v3196_v59 }
 0x6a8   :  { %v3198_v61 = vpop.eup %3197 }
 0x6a9   :  { %3199 = vrcp.f32 %v486_v60  ;;  %v487_v62 = vadd.f32 1.0, %v3198_v61 }
 0x6ab   :  { %3201 = vrcp.f32 %v487_v62 }
 0x6b3   :  { %v3200_v14 = vpop.eup %3199 }
 0x6b4   :  { %v492_v63 = vmul.f32 2.0, %v3200_v14 }
 0x6b5   :  { %v3202_v0 = vpop.eup %3201 }
 0x6b6   :  { %v2716_v1 = vadd.f32 -1.0, %v492_v63  ;;  %v493_v16 = vmul.f32 2.0, %v3202_v0  ;;  %v3137_v63 = vld [vmem:[%s4114_s2] sm:$0xff]  }
 0x6b8   :  { %v496_v2 = vsel %vm3501_vm4, %v2716_v1, %v3200_v14  ;;  %v2717_v4 = vadd.f32 -1.0, %v493_v16  ;;  %v3136_v14 = vld [vmem:[%s4113_s1] sm:$0xff]   ;;  %v3139_v1 = vld [vmem:[%s4112_s0 + $0x28] sm:$0xff]  }
 0x6b9   :  { %502 = vrot.lane.b32.xlu0 %v496_v2, %s3391_s3  ;;  %v498_v18 = vmul.f32 %v496_v2, %v394_v34  ;;  %v157_v34 = vadd.f32 %v3490_v15, %v3497_v17  ;;  %2965 = vmatprep.subr.bf16.mxu0 %v3136_v14  ;;  %v3140_v16 = vld [vmem:[%s4114_s2 + $0x8] sm:$0xff]  }
 0x6ba   :  { %v497_v5 = vsel %vm3501_vm4, %v2717_v4, %v3202_v0  ;;  %v3138_v0 = vld [vmem:[%s4112_s0 + $0x20] sm:$0xff]   ;;  %2966 = vmatpush3.bf16.msra.mxu0 %v3136_v14 }
 0x6bb   :  { %504 = vrot.lane.b32.xlu1 %v497_v5, %s3391_s3  ;;  %v499_v21 = vmul.f32 %v497_v5, %v395_v38  ;;  %2967 = vmatprep.mubr.msk.bf16.mxu0 %vm82_vm0, %v3138_v0 }
 0x6bc   :  { %2991 = vmatprep.subr.bf16.mxu0 %v3388_v3 }
 0x6bd   :  { %2968 = vmatmul.mubr.msk.bf16.vlgmr.msra.gmra.mrb[4].mxu0 %vm82_vm0, %v3139_v1 }
 0x72b   :  { %v503_v6 = vpop.permute.xlu0 %502 }
 0x72c   :  { %v508_v7 = vmul.f32 %v503_v6, %v496_v2 }
 0x72d   :  { %v505_v10 = vpop.permute.xlu1 %504 }
 0x72e   :  { %v509_v12 = vmul.f32 %v505_v10, %v497_v5  ;;  %512 = vrot.lane.b32.xlu0 %v508_v7, %s3392_s25 }
 0x730   :  { %514 = vrot.lane.b32.xlu1 %v509_v12, %s3392_s25 }
 0x7a0   :  { %v513_v19 = vpop.permute.xlu0 %512 }
 0x7a1   :  { %v518_v20 = vadd.f32 %v513_v19, %v498_v18  ;;  %v3620_v18 = vpop.f32.mrb[4].mxu0 }
 0x7a2   :  { %v515_v9 = vpop.permute.xlu1 %514  ;;  %v752_v19 = vpop.f32.mrb[5].mxu0 }
 0x7a3   :  { %3203 = vtanh.f32 %v518_v20  ;;  %v519_v22 = vadd.f32 %v515_v9, %v499_v21 }
 0x7a5   :  { %3205 = vtanh.f32 %v519_v22 }
 0x7ad   :  { %v3204_v11 = vpop.eup %3203 }
 0x7ae   :  { %524 = vrot.lane.b32.xlu0 %v3204_v11, %s3391_s3 }
 0x7af   :  { %v3206_v25 = vpop.eup %3205 }
 0x7b0   :  { %526 = vrot.lane.b32.xlu1 %v3206_v25, %s3391_s3 }
 0x820   :  { %v525_v26 = vpop.permute.xlu0 %524 }
 0x821   :  { %v530_v28 = vmul.f32 %v525_v26, %v496_v2 }
 0x822   :  { %v527_v27 = vpop.permute.xlu1 %526 }
 0x823   :  { %v531_v29 = vmul.f32 %v527_v27, %v497_v5 }
 0x825   :  { %v532_v30 = vpack.c.bf16 %v531_v29, %v530_v28 }
 0x827   :  { %534 = vrot.lane.b32.xlu0 %v532_v30, %s3392_s25 }
 0x899   :  { %v535_v31 = vpop.permute.xlu0 %534 }
 0x89a   :  { %538 = vst.msk [vmem:[#allocation2 + $0x10] sm:$0xff] %vm186_vm5, %v535_v31  ;;  %2962 = vmatmul.mubr.msk.bf16.vlgmr.msra.gmra.mrb[16].mxu1 %vm186_vm5, %v535_v31 }
 0x89b   :  { %2979 = vmatprep.mubr.msk.bf16.mxu1 %vm3389_vm1, %v3388_v3  ;;  %2976 = vmatpush3.bf16.msra.mxu1 %v3137_v63 }
 0x89c   :  { %2977 = vmatprep.subr.bf16.mxu1 %v3388_v3 }
 0x89f   :  { %2978 = vmatpush3.bf16.msra.mxu1 %v3140_v16 }
 0x8a0   :  { %2983 = vmatprep.subr.bf16.mxu1 %v3388_v3 }
 0x96d   :  { %v595_v33 = vpop.f32.mrb[16].mxu1 }
 0x96e   :  { %v602_v35 = vadd.f32 %v595_v33, %v154_v32  ;;  %v2963_v36 = vpop.f32.mrb[17].mxu1 }
 0x96f   :  { %v598_v38 = vpop.f32.mrb[18].mxu1 }
 0x970   :  { %v2721_v39 = vmul.f32 -1.442695, %v602_v35  ;;  %v603_v40 = vadd.f32 %v598_v38, %v157_v34  ;;  %v2964_v41 = vpop.f32.mrb[19].mxu1 }
 0x972   :  { %3207 = vpow2.f32 %v2721_v39  ;;  %v2722_v42 = vmul.f32 -1.442695, %v603_v40 }
 0x974   :  { %3209 = vpow2.f32 %v2722_v42 }
 0x97c   :  { %v3208_v43 = vpop.eup %3207 }
 0x97d   :  { %v610_v44 = vadd.f32 1.0, %v3208_v43 }
 0x97e   :  { %v3210_v45 = vpop.eup %3209 }
 0x97f   :  { %3211 = vrcp.f32 %v610_v44  ;;  %v611_v46 = vadd.f32 1.0, %v3210_v45 }
 0x981   :  { %3213 = vrcp.f32 %v611_v46 }
 0x989   :  { %v3212_v13 = vpop.eup %3211 }
 0x98a   :  { %v616_v47 = vmul.f32 2.0, %v3212_v13 }
 0x98b   :  { %v3214_v48 = vpop.eup %3213 }
 0x98c   :  { %v2723_v49 = vadd.f32 -1.0, %v616_v47  ;;  %v617_v15 = vmul.f32 2.0, %v3214_v48 }
 0x98e   :  { %v620_v50 = vsel %vm3501_vm4, %v2723_v49, %v3212_v13  ;;  %v2724_v51 = vadd.f32 -1.0, %v617_v15 }
 0x98f   :  { %626 = vrot.lane.b32.xlu1 %v620_v50, %s3391_s3  ;;  %v622_v57 = vmul.f32 %v620_v50, %v518_v20  ;;  %v3622_v20 = vpop.f32.mrb[6].mxu0 }
 0x990   :  { %v621_v52 = vsel %vm3501_vm4, %v2724_v51, %v3214_v48  ;;  %v755_v21 = vpop.f32.mrb[7].mxu0  ;;  %v764_v63 = vadd.f32 %v3622_v20, %v3497_v17 }
 0x991   :  { %628 = vrot.lane.b32.xlu0 %v621_v52, %s3391_s3  ;;  %v623_v60 = vmul.f32 %v621_v52, %v519_v22  ;;  %v753_v22 = vadd.f32 %v3497_v17, %v752_v19  ;;  %v756_v24 = vadd.f32 %v3497_v17, %v755_v21 }
 0xa01   :  { %v627_v53 = vpop.permute.xlu1 %626 }
 0xa02   :  { %v632_v54 = vmul.f32 %v627_v53, %v620_v50  ;;  %v3142_v53 = vld [vmem:[%s4114_s2 + $0x8] sm:$0xff]  }
 0xa03   :  { %v629_v55 = vpop.permute.xlu0 %628 }
 0xa04   :  { %v633_v56 = vmul.f32 %v629_v55, %v621_v52  ;;  %636 = vrot.lane.b32.xlu1 %v632_v54, %s3392_s25 }
 0xa06   :  { %638 = vrot.lane.b32.xlu0 %v633_v56, %s3392_s25 }
 0xa76   :  { %v637_v58 = vpop.permute.xlu1 %636 }
 0xa77   :  { %v3591_v59 = vadd.f32 %v637_v58, %v622_v57 }
 0xa78   :  { %v639_v61 = vpop.permute.xlu0 %638 }
 0xa79   :  { %3215 = vtanh.f32 %v3591_v59  ;;  %v3594_v62 = vadd.f32 %v639_v61, %v623_v60 }
 0xa7b   :  { %3217 = vtanh.f32 %v3594_v62 }
 0xa83   :  { %v3216_v2 = vpop.eup %3215 }
 0xa84   :  { %648 = vrot.lane.b32.xlu1 %v3216_v2, %s3391_s3 }
 0xa85   :  { %v3218_v4 = vpop.eup %3217 }
 0xa86   :  { %650 = vrot.lane.b32.xlu0 %v3218_v4, %s3391_s3 }
 0xaf6   :  { %v649_v5 = vpop.permute.xlu1 %648 }
 0xaf7   :  { %v654_v7 = vmul.f32 %v649_v5, %v620_v50 }
 0xaf8   :  { %v651_v6 = vpop.permute.xlu0 %650 }
 0xaf9   :  { %v655_v10 = vmul.f32 %v651_v6, %v621_v52  ;;  %v3141_v52 = vld [vmem:[%s4114_s2] sm:$0xff]  }
 0xafb   :  { %v656_v12 = vpack.c.bf16 %v655_v10, %v654_v7 }
 0xafd   :  { %658 = vrot.lane.b32.xlu1 %v656_v12, %s3392_s25 }
 0xb6f   :  { %v659_v9 = vpop.permute.xlu1 %658 }
 0xb70   :  { %662 = vst.msk [vmem:[#allocation2 + $0x18] sm:$0xff] %vm186_vm5, %v659_v9  ;;  %2980 = vmatmul.mubr.msk.bf16.vlgmr.msra.gmra.mrb[20].mxu1 %vm186_vm5, %v659_v9 }
 0xb71   :  { %2987 = vmatprep.mubr.msk.bf16.mxu1 %vm3389_vm1, %v3388_v3  ;;  %2984 = vmatpush3.bf16.msra.mxu1 %v3141_v52  ;;  %v1299_v52 = vld [vmem:[#allocation2] sm:$0xff] }
 0xb72   :  { %2985 = vmatprep.subr.bf16.mxu1 %v3388_v3 }
 0xb75   :  { %2986 = vmatpush3.bf16.msra.mxu1 %v3142_v53  ;;  %v1300_v53 = vld [vmem:[#allocation2 + $0x8] sm:$0xff] }
 0xb76   :  { %2999 = vmatprep.subr.bf16.mxu1 %v3388_v3 }
 0xc43   :  { %v846_v23 = vpop.f32.mrb[20].mxu1 }
 0xc44   :  { %v853_v11 = vadd.f32 %v846_v23, %v753_v22  ;;  %v2981_v25 = vpop.f32.mrb[21].mxu1 }
 0xc45   :  { %v849_v26 = vpop.f32.mrb[22].mxu1 }
 0xc46   :  { %v2738_v27 = vmul.f32 -1.442695, %v853_v11  ;;  %v854_v28 = vadd.f32 %v849_v26, %v756_v24  ;;  %v2982_v29 = vpop.f32.mrb[23].mxu1 }
 0xc48   :  { %3219 = vpow2.f32 %v2738_v27  ;;  %v2739_v30 = vmul.f32 -1.442695, %v854_v28 }
 0xc4a   :  { %3221 = vpow2.f32 %v2739_v30 }
 0xc52   :  { %v3220_v31 = vpop.eup %3219 }
 0xc53   :  { %v861_v32 = vadd.f32 1.0, %v3220_v31 }
 0xc54   :  { %v3222_v33 = vpop.eup %3221 }
 0xc55   :  { %3223 = vrcp.f32 %v861_v32  ;;  %v862_v34 = vadd.f32 1.0, %v3222_v33 }
 0xc57   :  { %3225 = vrcp.f32 %v862_v34 }
 0xc5f   :  { %v3224_v35 = vpop.eup %3223 }
 0xc60   :  { %v867_v36 = vmul.f32 2.0, %v3224_v35 }
 0xc61   :  { %v3226_v38 = vpop.eup %3225 }
 0xc62   :  { %v2740_v39 = vadd.f32 -1.0, %v867_v36  ;;  %v868_v40 = vmul.f32 2.0, %v3226_v38  ;;  %v3144_v36 = vld [vmem:[%s4112_s0 + $0x30] sm:$0xff]  }
 0xc63   :  { %2971 = vmatprep.mubr.msk.bf16.mxu0 %vm82_vm0, %v3144_v36 }
 0xc64   :  { %v871_v41 = vsel %vm3501_vm4, %v2740_v39, %v3224_v35  ;;  %v2741_v42 = vadd.f32 -1.0, %v868_v40  ;;  %v3143_v35 = vld [vmem:[%s4114_s2] sm:$0xff]   ;;  %v3146_v39 = vld [vmem:[%s4114_s2 + $0x8] sm:$0xff]  }
 0xc65   :  { %877 = vrot.lane.b32.xlu0 %v871_v41, %s3391_s3  ;;  %v873_v47 = vmul.f32 %v871_v41, %v3591_v59  ;;  %2992 = vmatpush3.bf16.msra.mxu0 %v3143_v35 }
 0xc66   :  { %v872_v43 = vsel %vm3501_vm4, %v2741_v42, %v3226_v38  ;;  %v3145_v38 = vld [vmem:[%s4112_s0 + $0x38] sm:$0xff]   ;;  %2993 = vmatprep.subr.bf16.mxu0 %v3388_v3  ;;  %v3147_v42 = vld [vmem:[%s4116_s4] sm:$0xff]  }
 0xc67   :  { %879 = vrot.lane.b32.xlu1 %v872_v43, %s3391_s3  ;;  %v874_v15 = vmul.f32 %v872_v43, %v3594_v62  ;;  %v761_v62 = vadd.f32 %v3620_v18, %v3497_v17  ;;  %2972 = vmatmul.mubr.msk.bf16.gmra.mrb[8].mxu0 %vm82_vm0, %v3145_v38 }
 0xc68   :  { %2995 = vmatprep.mubr.msk.bf16.mxu0 %vm3389_vm1, %v3388_v3 }
 0xc69   :  { %2994 = vmatpush3.bf16.msra.mxu0 %v3146_v39 }
 0xc6a   :  { %3007 = vmatprep.subr.bf16.mxu0 %v3147_v42 }
 0xcd7   :  { %v878_v44 = vpop.permute.xlu0 %877 }
 0xcd8   :  { %v883_v45 = vmul.f32 %v878_v44, %v871_v41 }
 0xcd9   :  { %v880_v46 = vpop.permute.xlu1 %879 }
 0xcda   :  { %v884_v13 = vmul.f32 %v880_v46, %v872_v43  ;;  %887 = vrot.lane.b32.xlu0 %v883_v45, %s3392_s25 }
 0xcdc   :  { %889 = vrot.lane.b32.xlu1 %v884_v13, %s3392_s25 }
 0xd4c   :  { %v888_v48 = vpop.permute.xlu0 %887 }
 0xd4d   :  { %v893_v49 = vadd.f32 %v888_v48, %v873_v47  ;;  %v3696_v47 = vpop.f32.mrb[8].mxu0 }
 0xd4e   :  { %v890_v50 = vpop.permute.xlu1 %889  ;;  %v768_v48 = vpop.f32.mrb[9].mxu0 }
 0xd4f   :  { %3227 = vtanh.f32 %v893_v49  ;;  %v894_v51 = vadd.f32 %v890_v50, %v874_v15  ;;  %v3148_v50 = vld [vmem:[%s4116_s4 + $0x8] sm:$0xff]  }
 0xd51   :  { %3229 = vtanh.f32 %v894_v51 }
 0xd59   :  { %v3228_v54 = vpop.eup %3227 }
 0xd5a   :  { %899 = vrot.lane.b32.xlu0 %v3228_v54, %s3391_s3  ;;  %v1301_v54 = vld [vmem:[#allocation2 + $0x10] sm:$0xff] }
 0xd5b   :  { %v3230_v55 = vpop.eup %3229 }
 0xd5c   :  { %901 = vrot.lane.b32.xlu1 %v3230_v55, %s3391_s3  ;;  %v1302_v55 = vld [vmem:[#allocation2 + $0x18] sm:$0xff] }
 0xdcc   :  { %v900_v56 = vpop.permute.xlu0 %899 }
 0xdcd   :  { %v905_v58 = vmul.f32 %v900_v56, %v871_v41  ;;  %v769_v56 = vadd.f32 %v3497_v17, %v768_v48 }
 0xdce   :  { %v902_v57 = vpop.permute.xlu1 %901 }
 0xdcf   :  { %v906_v59 = vmul.f32 %v902_v57, %v872_v43 }
 0xdd1   :  { %v907_v60 = vpack.c.bf16 %v906_v59, %v905_v58 }
 0xdd3   :  { %910 = vrot.lane.b32.xlu0 %v907_v60, %s3392_s25 }
 0xe45   :  { %v911_v61 = vpop.permute.xlu0 %910 }
 0xe46   :  { %917 = vst.msk [vmem:[#allocation2 + $0x20] sm:$0xff] %vm186_vm5, %v911_v61  ;;  %2988 = vmatmul.mubr.msk.bf16.vlgmr.msra.gmra.mrb[24].mxu1 %vm186_vm5, %v911_v61 }
 0xe47   :  { %3003 = vmatprep.mubr.msk.bf16.mxu1 %vm3389_vm1, %v3388_v3 }
 0xf19   :  { %v973_v14 = vpop.f32.mrb[24].mxu1 }
 0xf1a   :  { %v980_v0 = vadd.f32 %v973_v14, %v761_v62  ;;  %v2989_v1 = vpop.f32.mrb[25].mxu1 }
 0xf1b   :  { %v976_v16 = vpop.f32.mrb[26].mxu1 }
 0xf1c   :  { %v2745_v2 = vmul.f32 -1.442695, %v980_v0  ;;  %v981_v4 = vadd.f32 %v976_v16, %v764_v63  ;;  %v2990_v5 = vpop.f32.mrb[27].mxu1 }
 0xf1e   :  { %3231 = vpow2.f32 %v2745_v2  ;;  %v2746_v6 = vmul.f32 -1.442695, %v981_v4 }
 0xf20   :  { %3233 = vpow2.f32 %v2746_v6 }
 0xf28   :  { %v3232_v7 = vpop.eup %3231 }
 0xf29   :  { %v988_v10 = vadd.f32 1.0, %v3232_v7 }
 0xf2a   :  { %v3234_v12 = vpop.eup %3233 }
 0xf2b   :  { %3235 = vrcp.f32 %v988_v10  ;;  %v989_v19 = vadd.f32 1.0, %v3234_v12 }
 0xf2d   :  { %3237 = vrcp.f32 %v989_v19 }
 0xf35   :  { %v3236_v18 = vpop.eup %3235 }
 0xf36   :  { %v994_v21 = vmul.f32 2.0, %v3236_v18 }
 0xf37   :  { %v3238_v9 = vpop.eup %3237 }
 0xf38   :  { %v2747_v22 = vadd.f32 -1.0, %v994_v21  ;;  %v995_v20 = vmul.f32 2.0, %v3238_v9 }
 0xf3a   :  { %v998_v23 = vsel %vm3501_vm4, %v2747_v22, %v3236_v18  ;;  %v2748_v24 = vadd.f32 -1.0, %v995_v20 }
 0xf3b   :  { %1004 = vrot.lane.b32.xlu1 %v998_v23, %s3391_s3  ;;  %v1000_v29 = vmul.f32 %v998_v23, %v893_v49  ;;  %v3698_v49 = vpop.f32.mrb[10].mxu0 }
 0xf3c   :  { %v999_v11 = vsel %vm3501_vm4, %v2748_v24, %v3238_v9  ;;  %v771_v15 = vpop.f32.mrb[11].mxu0 }
 0xf3d   :  { %1006 = vrot.lane.b32.xlu0 %v999_v11, %s3391_s3  ;;  %v1001_v32 = vmul.f32 %v999_v11, %v894_v51  ;;  %v772_v58 = vadd.f32 %v3497_v17, %v771_v15  ;;  %v3152_v15 = vld [vmem:[%s4117_s5 + $0x8] sm:$0xff]  }
 0xfad   :  { %v1005_v25 = vpop.permute.xlu1 %1004 }
 0xfae   :  { %v1010_v26 = vmul.f32 %v1005_v25, %v998_v23 }
 0xfaf   :  { %v1007_v27 = vpop.permute.xlu0 %1006 }
 0xfb0   :  { %v1011_v28 = vmul.f32 %v1007_v27, %v999_v11  ;;  %1014 = vrot.lane.b32.xlu1 %v1010_v26, %s3392_s25 }
 0xfb2   :  { %1016 = vrot.lane.b32.xlu0 %v1011_v28, %s3392_s25 }
0x1022   :  { %v1015_v30 = vpop.permute.xlu1 %1014 }
0x1023   :  { %v3667_v31 = vadd.f32 %v1015_v30, %v1000_v29 }
0x1024   :  { %v1017_v33 = vpop.permute.xlu0 %1016 }
0x1025   :  { %3239 = vtanh.f32 %v3667_v31  ;;  %v3670_v34 = vadd.f32 %v1017_v33, %v1001_v32 }
0x1027   :  { %3241 = vtanh.f32 %v3670_v34 }
0x102f   :  { %v3240_v40 = vpop.eup %3239 }
0x1030   :  { %1026 = vrot.lane.b32.xlu1 %v3240_v40, %s3391_s3  ;;  %v3149_v40 = vld [vmem:[%s4114_s2] sm:$0xff]  }
0x1031   :  { %v3242_v41 = vpop.eup %3241  ;;  %3000 = vmatpush3.bf16.msra.mxu1 %v3149_v40  ;;  %v3154_v40 = vld [vmem:[%s4117_s5 + $0x8] sm:$0xff]  }
0x1032   :  { %1028 = vrot.lane.b32.xlu0 %v3242_v41, %s3391_s3  ;;  %3001 = vmatprep.subr.bf16.mxu1 %v3388_v3 }
0x10a2   :  { %v1027_v43 = vpop.permute.xlu1 %1026 }
0x10a3   :  { %v1032_v45 = vmul.f32 %v1027_v43, %v998_v23 }
0x10a4   :  { %v1029_v44 = vpop.permute.xlu0 %1028 }
0x10a5   :  { %v1033_v46 = vmul.f32 %v1029_v44, %v999_v11 }
0x10a7   :  { %v1034_v13 = vpack.c.bf16 %v1033_v46, %v1032_v45 }
0x10a9   :  { %1037 = vrot.lane.b32.xlu1 %v1034_v13, %s3392_s25  ;;  %v3151_v13 = vld [vmem:[%s4117_s5] sm:$0xff]  }
0x111b   :  { %v1038_v51 = vpop.permute.xlu1 %1037 }
0x111c   :  { %1044 = vst.msk [vmem:[#allocation2 + $0x28] sm:$0xff] %vm186_vm5, %v1038_v51  ;;  %2996 = vmatmul.mubr.msk.bf16.vlgmr.msra.gmra.mrb[12].mxu0 %vm186_vm5, %v1038_v51 }
0x111d   :  { %3008 = vmatpush3.bf16.msra.mxu0 %v3147_v42  ;;  %3011 = vmatprep.mubr.msk.bf16.mxu0 %vm186_vm5, %v1299_v52  ;;  %v780_v52 = vadd.f32 %v3698_v49, %v3497_v17 }
0x111e   :  { %3009 = vmatprep.subr.bf16.mxu0 %v3148_v50 }
0x1121   :  { %3010 = vmatpush3.bf16.msra.mxu0 %v3148_v50  ;;  %v777_v50 = vadd.f32 %v3696_v47, %v3497_v17 }
0x1122   :  { %3035 = vmatprep.subr.bf16.mxu0 %v3388_v3 }
0x1124   :  { %3012 = vmatmul.mubr.msk.bf16.vlgmr.msra.gmra.mrb[16].mxu0 %vm186_vm5, %v1300_v53 }
0x1125   :  { %3015 = vmatprep.mubr.msk.bf16.mxu0 %vm186_vm5, %v1301_v54 }
0x112c   :  { %3016 = vmatmul.mubr.msk.bf16.gmra.mrb[20].mxu0 %vm186_vm5, %v1302_v55 }
0x112d   :  { %3039 = vmatprep.mubr.msk.bf16.mxu0 %vm3389_vm1, %v3388_v3 }
0x11ef   :  { %v1100_v57 = vpop.f32.mrb[12].mxu0 }
0x11f0   :  { %v1107_v59 = vadd.f32 %v1100_v57, %v769_v56  ;;  %v2997_v60 = vpop.f32.mrb[13].mxu0 }
0x11f1   :  { %v1103_v61 = vpop.f32.mrb[14].mxu0 }
0x11f2   :  { %v2752_v62 = vmul.f32 -1.442695, %v1107_v59  ;;  %v1108_v14 = vadd.f32 %v1103_v61, %v772_v58  ;;  %v2998_v63 = vpop.f32.mrb[15].mxu0 }
0x11f4   :  { %3243 = vpow2.f32 %v2752_v62  ;;  %v2753_v0 = vmul.f32 -1.442695, %v1108_v14 }
0x11f6   :  { %3245 = vpow2.f32 %v2753_v0 }
0x11f7   :  { %v3714_v1 = vpop.f32.mrb[16].mxu0 }
0x11f8   :  { %v3716_v16 = vpop.f32.mrb[17].mxu0 }
0x11f9   :  { %v3718_v2 = vpop.f32.mrb[18].mxu0 }
0x11fa   :  { %v3720_v4 = vpop.f32.mrb[19].mxu0 }
0x11fe   :  { %v3244_v5 = vpop.eup %3243 }
0x11ff   :  { %v1115_v6 = vadd.f32 1.0, %v3244_v5  ;;  %v3722_v7 = vpop.f32.mrb[20].mxu0 }
0x1200   :  { %v3246_v10 = vpop.eup %3245  ;;  %v3724_v12 = vpop.f32.mrb[21].mxu0 }
0x1201   :  { %3247 = vrcp.f32 %v1115_v6  ;;  %v1116_v19 = vadd.f32 1.0, %v3246_v10  ;;  %v3726_v18 = vpop.f32.mrb[22].mxu0 }
0x1202   :  { %v3728_v21 = vpop.f32.mrb[23].mxu0 }
0x1203   :  { %3249 = vrcp.f32 %v1116_v19 }
0x120b   :  { %v3248_v9 = vpop.eup %3247 }
0x120c   :  { %v1121_v22 = vmul.f32 2.0, %v3248_v9 }
0x120d   :  { %v3250_v20 = vpop.eup %3249 }
0x120e   :  { %v2754_v23 = vadd.f32 -1.0, %v1121_v22  ;;  %v1122_v24 = vmul.f32 2.0, %v3250_v20 }
0x1210   :  { %v1125_v11 = vsel %vm3501_vm4, %v2754_v23, %v3248_v9  ;;  %v2755_v25 = vadd.f32 -1.0, %v1122_v24 }
0x1211   :  { %1131 = vrot.lane.b32.xlu0 %v1125_v11, %s3391_s3  ;;  %v1127_v32 = vmul.f32 %v1125_v11, %v3667_v31  ;;  %v3150_v31 = vld [vmem:[%s4114_s2 + $0x8] sm:$0xff]  }
0x1212   :  { %v1126_v26 = vsel %vm3501_vm4, %v2755_v25, %v3250_v20  ;;  %3002 = vmatpush3.bf16.msra.mxu1 %v3150_v31 }
0x1213   :  { %1133 = vrot.lane.b32.xlu1 %v1126_v26, %s3391_s3  ;;  %v1128_v36 = vmul.f32 %v1126_v26, %v3670_v34  ;;  %3019 = vmatprep.subr.bf16.mxu1 %v3388_v3 }
0x1283   :  { %v1132_v27 = vpop.permute.xlu0 %1131 }
0x1284   :  { %v1137_v28 = vmul.f32 %v1132_v27, %v1125_v11 }
0x1285   :  { %v1134_v29 = vpop.permute.xlu1 %1133 }
0x1286   :  { %v1138_v30 = vmul.f32 %v1134_v29, %v1126_v26  ;;  %1141 = vrot.lane.b32.xlu0 %v1137_v28, %s3392_s25 }
0x1288   :  { %1143 = vrot.lane.b32.xlu1 %v1138_v30, %s3392_s25 }
0x12f8   :  { %v1142_v33 = vpop.permute.xlu0 %1141 }
0x12f9   :  { %v3739_v35 = vadd.f32 %v1142_v33, %v1127_v32 }
0x12fa   :  { %v1144_v38 = vpop.permute.xlu1 %1143 }
0x12fb   :  { %3251 = vtanh.f32 %v3739_v35  ;;  %v3743_v39 = vadd.f32 %v1144_v38, %v1128_v36  ;;  %v3153_v38 = vld [vmem:[%s4117_s5] sm:$0xff]  }
0x12fd   :  { %3253 = vtanh.f32 %v3743_v39 }
0x1305   :  { %v3252_v41 = vpop.eup %3251 }
0x1306   :  { %1153 = vrot.lane.b32.xlu0 %v3252_v41, %s3391_s3 }
0x1307   :  { %v3254_v34 = vpop.eup %3253 }
0x1308   :  { %1155 = vrot.lane.b32.xlu1 %v3254_v34, %s3391_s3 }
0x1378   :  { %v1154_v42 = vpop.permute.xlu0 %1153 }
0x1379   :  { %v1159_v44 = vmul.f32 %v1154_v42, %v1125_v11 }
0x137a   :  { %v1156_v43 = vpop.permute.xlu1 %1155 }
0x137b   :  { %v1160_v45 = vmul.f32 %v1156_v43, %v1126_v26 }
0x137d   :  { %v1161_v46 = vpack.c.bf16 %v1160_v45, %v1159_v44 }
0x137f   :  { %1164 = vrot.lane.b32.xlu0 %v1161_v46, %s3392_s25 }
0x13f1   :  { %v1165_v48 = vpop.permute.xlu0 %1164 }
0x13f2   :  { %1171 = vst.msk [vmem:[#allocation2 + $0x30] sm:$0xff] %vm186_vm5, %v1165_v48  ;;  %3004 = vmatmul.mubr.msk.bf16.vlgmr.msra.gmra.mrb[28].mxu1 %vm186_vm5, %v1165_v48 }
0x13f3   :  { %3020 = vmatpush3.bf16.msra.mxu1 %v3151_v13  ;;  %3023 = vmatprep.mubr.msk.bf16.mxu1 %vm3389_vm1, %v3388_v3 }
0x13f4   :  { %3021 = vmatprep.subr.bf16.mxu1 %v3388_v3 }
0x13f7   :  { %3022 = vmatpush3.bf16.msra.mxu1 %v3152_v15 }
0x13f8   :  { %3027 = vmatprep.subr.bf16.mxu1 %v3388_v3 }
0x13fa   :  { %3024 = vmatmul.mubr.bf16.vlgmr.msra.gmra.mrb[32].mxu1 %v3390_v8  ;;  %v3783_v8 = vld [vmem:[%s4118_s6] ss:$0 sm:$0xff] }
0x13fb   :  { %3031 = vmatprep.mubr.msk.bf16.mxu1 %vm3389_vm1, %v3388_v3  ;;  %v1373_v58 = vadd.f32 %v3783_v8, %v3716_v16  ;;  %v1376_v59 = vadd.f32 %v3783_v8, %v3720_v4  ;;  %3028 = vmatpush3.bf16.msra.mxu1 %v3153_v38  ;;  %v1381_v13 = vadd.f32 %v3714_v1, %v3783_v8 }
0x13fc   :  { %3029 = vmatprep.subr.bf16.mxu1 %v3388_v3  ;;  %v1384_v15 = vadd.f32 %v3718_v2, %v3783_v8 }
0x13ff   :  { %3030 = vmatpush3.bf16.msra.mxu1 %v3154_v40  ;;  %v1896_v40 = vld [vmem:[#allocation2 + $0x20] sm:$0xff] }
0x1400   :  { %3043 = vmatprep.subr.bf16.mxu1 %v3388_v3 }
0x14c5   :  { %v1227_v51 = vpop.f32.mrb[28].mxu1 }
0x14c6   :  { %v3776_v53 = vadd.f32 %v1227_v51, %v777_v50  ;;  %v3005_v54 = vpop.f32.mrb[29].mxu1 }
0x14c7   :  { %v1230_v55 = vpop.f32.mrb[30].mxu1 }
0x14c8   :  { %v3778_v56 = vadd.f32 %v1230_v55, %v780_v52  ;;  %v3006_v57 = vpop.f32.mrb[31].mxu1 }
0x14cd   :  { %v1463_v47 = vpop.f32.mrb[32].mxu1 }
0x14ce   :  { %v1470_v17 = vadd.f32 %v1463_v47, %v1373_v58  ;;  %v3025_v49 = vpop.f32.mrb[33].mxu1 }
0x14cf   :  { %v1466_v60 = vpop.f32.mrb[34].mxu1 }
0x14d0   :  { %v2772_v61 = vmul.f32 -1.442695, %v1470_v17  ;;  %v1471_v62 = vadd.f32 %v1466_v60, %v1376_v59  ;;  %v3026_v14 = vpop.f32.mrb[35].mxu1 }
0x14d2   :  { %3255 = vpow2.f32 %v2772_v61  ;;  %v2773_v63 = vmul.f32 -1.442695, %v1471_v62 }
0x14d4   :  { %3257 = vpow2.f32 %v2773_v63 }
0x14dc   :  { %v3256_v0 = vpop.eup %3255 }
0x14dd   :  { %v1478_v5 = vadd.f32 1.0, %v3256_v0 }
0x14de   :  { %v3258_v6 = vpop.eup %3257 }
0x14df   :  { %3259 = vrcp.f32 %v1478_v5  ;;  %v1479_v10 = vadd.f32 1.0, %v3258_v6 }
0x14e1   :  { %3261 = vrcp.f32 %v1479_v10 }
0x14e9   :  { %v3260_v16 = vpop.eup %3259 }
0x14ea   :  { %v1484_v19 = vmul.f32 2.0, %v3260_v16 }
0x14eb   :  { %v3262_v9 = vpop.eup %3261 }
0x14ec   :  { %v2774_v22 = vadd.f32 -1.0, %v1484_v19  ;;  %v1485_v4 = vmul.f32 2.0, %v3262_v9 }
0x14ee   :  { %v1488_v20 = vsel %vm3501_vm4, %v2774_v22, %v3260_v16  ;;  %v2775_v23 = vadd.f32 -1.0, %v1485_v4 }
0x14ef   :  { %1494 = vrot.lane.b32.xlu1 %v1488_v20, %s3391_s3  ;;  %v1490_v28 = vmul.f32 0.0, %v1488_v20 }
0x14f0   :  { %v1489_v24 = vsel %vm3501_vm4, %v2775_v23, %v3262_v9 }
0x14f1   :  { %1496 = vrot.lane.b32.xlu0 %v1489_v24, %s3391_s3  ;;  %v1491_v32 = vmul.f32 0.0, %v1489_v24 }
0x1561   :  { %v1495_v11 = vpop.permute.xlu1 %1494 }
0x1562   :  { %v1500_v25 = vmul.f32 %v1495_v11, %v1488_v20  ;;  %v3156_v11 = vld [vmem:[%s4117_s5 + $0x8] sm:$0xff]  }
0x1563   :  { %v1497_v26 = vpop.permute.xlu0 %1496 }
0x1564   :  { %v1501_v27 = vmul.f32 %v1497_v26, %v1489_v24  ;;  %1504 = vrot.lane.b32.xlu1 %v1500_v25, %s3392_s25 }
0x1566   :  { %1506 = vrot.lane.b32.xlu0 %v1501_v27, %s3392_s25  ;;  %v3157_v27 = vld [vmem:[%s4116_s4] sm:$0xff]  }
0x15d6   :  { %v1505_v29 = vpop.permute.xlu1 %1504 }
0x15d7   :  { %v1510_v30 = vadd.f32 %v1505_v29, %v1490_v28 }
0x15d8   :  { %v1507_v33 = vpop.permute.xlu0 %1506 }
0x15d9   :  { %3263 = vtanh.f32 %v1510_v30  ;;  %v1511_v36 = vadd.f32 %v1507_v33, %v1491_v32 }
0x15db   :  { %3265 = vtanh.f32 %v1511_v36 }
0x15e3   :  { %v3264_v31 = vpop.eup %3263 }
0x15e4   :  { %1516 = vrot.lane.b32.xlu1 %v3264_v31, %s3391_s3  ;;  %v1897_v31 = vld [vmem:[#allocation2 + $0x28] sm:$0xff] }
0x15e5   :  { %v3266_v41 = vpop.eup %3265 }
0x15e6   :  { %1518 = vrot.lane.b32.xlu0 %v3266_v41, %s3391_s3  ;;  %v1898_v41 = vld [vmem:[#allocation2 + $0x30] sm:$0xff] }
0x1656   :  { %v1517_v34 = vpop.permute.xlu1 %1516 }
0x1657   :  { %v1522_v43 = vmul.f32 %v1517_v34, %v1488_v20  ;;  %v1389_v34 = vadd.f32 %v3783_v8, %v3724_v12 }
0x1658   :  { %v1519_v42 = vpop.permute.xlu0 %1518 }
0x1659   :  { %v1523_v44 = vmul.f32 %v1519_v42, %v1489_v24  ;;  %v3155_v24 = vld [vmem:[%s4117_s5] sm:$0xff]  }
0x165a   :  { %3036 = vmatpush3.bf16.msra.mxu0 %v3155_v24 }
0x165b   :  { %v1524_v45 = vpack.c.bf16 %v1523_v44, %v1522_v43  ;;  %3037 = vmatprep.subr.bf16.mxu0 %v3388_v3  ;;  %v1392_v43 = vadd.f32 %v3783_v8, %v3728_v21 }
0x165d   :  { %1526 = vrot.lane.b32.xlu1 %v1524_v45, %s3392_s25 }
0x165e   :  { %3038 = vmatpush3.bf16.msra.mxu0 %v3156_v11 }
0x165f   :  { %3051 = vmatprep.subr.bf16.mxu0 %v3157_v27 }
0x16cf   :  { %v1527_v46 = vpop.permute.xlu1 %1526 }
0x16d0   :  { %1529 = vst.msk [vmem:[#allocation2] sm:$0xff] %vm186_vm5, %v1527_v46  ;;  %3032 = vmatmul.mubr.msk.bf16.vlgmr.msra.gmra.mrb[36].mxu1 %vm186_vm5, %v1527_v46 }
0x16d1   :  { %3047 = vmatprep.mubr.msk.bf16.mxu1 %vm3389_vm1, %v3388_v3 }
0x17a3   :  { %v1585_v48 = vpop.f32.mrb[36].mxu1 }
0x17a4   :  { %v1592_v50 = vadd.f32 %v1585_v48, %v1381_v13  ;;  %v3033_v51 = vpop.f32.mrb[37].mxu1 }
0x17a5   :  { %v1588_v52 = vpop.f32.mrb[38].mxu1 }
0x17a6   :  { %v2779_v54 = vmul.f32 -1.442695, %v1592_v50  ;;  %v1593_v55 = vadd.f32 %v1588_v52, %v1384_v15  ;;  %v3034_v57 = vpop.f32.mrb[39].mxu1 }
0x17a8   :  { %3267 = vpow2.f32 %v2779_v54  ;;  %v2780_v58 = vmul.f32 -1.442695, %v1593_v55 }
0x17aa   :  { %3269 = vpow2.f32 %v2780_v58 }
0x17b2   :  { %v3268_v47 = vpop.eup %3267 }
0x17b3   :  { %v1600_v59 = vadd.f32 1.0, %v3268_v47 }
0x17b4   :  { %v3270_v17 = vpop.eup %3269 }
0x17b5   :  { %3271 = vrcp.f32 %v1600_v59  ;;  %v1601_v49 = vadd.f32 1.0, %v3270_v17 }
0x17b7   :  { %3273 = vrcp.f32 %v1601_v49 }
0x17bf   :  { %v3272_v1 = vpop.eup %3271 }
0x17c0   :  { %v1606_v60 = vmul.f32 2.0, %v3272_v1 }
0x17c1   :  { %v3274_v61 = vpop.eup %3273 }
0x17c2   :  { %v2781_v62 = vadd.f32 -1.0, %v1606_v60  ;;  %v1607_v2 = vmul.f32 2.0, %v3274_v61 }
0x17c4   :  { %v1610_v14 = vsel %vm3501_vm4, %v2781_v62, %v3272_v1  ;;  %v2782_v63 = vadd.f32 -1.0, %v1607_v2 }
0x17c5   :  { %1616 = vrot.lane.b32.xlu0 %v1610_v14, %s3391_s3  ;;  %v1612_v19 = vmul.f32 %v1610_v14, %v1510_v30 }
0x17c6   :  { %v1611_v0 = vsel %vm3501_vm4, %v2782_v63, %v3274_v61 }
0x17c7   :  { %1618 = vrot.lane.b32.xlu1 %v1611_v0, %s3391_s3  ;;  %v1613_v4 = vmul.f32 %v1611_v0, %v1511_v36  ;;  %v3158_v36 = vld [vmem:[%s4116_s4 + $0x8] sm:$0xff]  }
0x1837   :  { %v1617_v5 = vpop.permute.xlu0 %1616 }
0x1838   :  { %v1622_v6 = vmul.f32 %v1617_v5, %v1610_v14 }
0x1839   :  { %v1619_v10 = vpop.permute.xlu1 %1618 }
0x183a   :  { %v1623_v16 = vmul.f32 %v1619_v10, %v1611_v0  ;;  %1626 = vrot.lane.b32.xlu0 %v1622_v6, %s3392_s25 }
0x183c   :  { %1628 = vrot.lane.b32.xlu1 %v1623_v16, %s3392_s25 }
0x18ac   :  { %v1627_v9 = vpop.permute.xlu0 %1626 }
0x18ad   :  { %v3824_v22 = vadd.f32 %v1627_v9, %v1612_v19 }
0x18ae   :  { %v1629_v20 = vpop.permute.xlu1 %1628 }
0x18af   :  { %3275 = vtanh.f32 %v3824_v22  ;;  %v3827_v23 = vadd.f32 %v1629_v20, %v1613_v4  ;;  %v3159_v4 = vld [vmem:[%s4117_s5] sm:$0xff]   ;;  %v3160_v20 = vld [vmem:[%s4117_s5 + $0x8] sm:$0xff]  }
0x18b0   :  { %3044 = vmatpush3.bf16.msra.mxu1 %v3159_v4 }
0x18b1   :  { %3277 = vtanh.f32 %v3827_v23  ;;  %3045 = vmatprep.subr.bf16.mxu1 %v3388_v3 }
0x18b4   :  { %3046 = vmatpush3.bf16.msra.mxu1 %v3160_v20 }
0x18b5   :  { %3063 = vmatprep.subr.bf16.mxu1 %v3388_v3 }
0x18b9   :  { %v3276_v25 = vpop.eup %3275 }
0x18ba   :  { %1638 = vrot.lane.b32.xlu0 %v3276_v25, %s3391_s3 }
0x18bb   :  { %v3278_v26 = vpop.eup %3277 }
0x18bc   :  { %1640 = vrot.lane.b32.xlu1 %v3278_v26, %s3391_s3 }
0x192c   :  { %v1639_v28 = vpop.permute.xlu0 %1638 }
0x192d   :  { %v1644_v30 = vmul.f32 %v1639_v28, %v1610_v14 }
0x192e   :  { %v1641_v29 = vpop.permute.xlu1 %1640 }
0x192f   :  { %v1645_v32 = vmul.f32 %v1641_v29, %v1611_v0  ;;  %v1397_v29 = vadd.f32 %v3722_v7, %v3783_v8 }
0x1931   :  { %v1646_v33 = vpack.c.bf16 %v1645_v32, %v1644_v30  ;;  %v1400_v32 = vadd.f32 %v3726_v18, %v3783_v8 }
0x1933   :  { %1648 = vrot.lane.b32.xlu0 %v1646_v33, %s3392_s25 }
0x19a5   :  { %v1649_v38 = vpop.permute.xlu0 %1648 }
0x19a6   :  { %1651 = vst.msk [vmem:[#allocation2 + $0x8] sm:$0xff] %vm186_vm5, %v1649_v38  ;;  %3040 = vmatmul.mubr.msk.bf16.vlgmr.msra.gmra.mrb[24].mxu0 %vm186_vm5, %v1649_v38 }
0x19a7   :  { %3052 = vmatpush3.bf16.msra.mxu0 %v3157_v27  ;;  %3055 = vmatprep.mubr.msk.bf16.mxu0 %vm186_vm5, %v1896_v40 }
0x19a8   :  { %3053 = vmatprep.subr.bf16.mxu0 %v3158_v36 }
0x19ab   :  { %3054 = vmatpush3.bf16.msra.mxu0 %v3158_v36 }
0x19ac   :  { %3079 = vmatprep.subr.bf16.mxu0 %v3388_v3 }
0x19ae   :  { %3056 = vmatmul.mubr.msk.bf16.vlgmr.msra.gmra.mrb[28].mxu0 %vm186_vm5, %v1897_v31 }
0x19af   :  { %3059 = vmatprep.mubr.msk.bf16.mxu0 %vm186_vm5, %v1898_v41 }
0x1a79   :  { %v1707_v42 = vpop.f32.mrb[24].mxu0 }
0x1a7a   :  { %v1714_v44 = vadd.f32 %v1707_v42, %v1389_v34  ;;  %v3041_v45 = vpop.f32.mrb[25].mxu0 }
0x1a7b   :  { %v1710_v46 = vpop.f32.mrb[26].mxu0 }
0x1a7c   :  { %v2786_v13 = vmul.f32 -1.442695, %v1714_v44  ;;  %v1715_v48 = vadd.f32 %v1710_v46, %v1392_v43  ;;  %v3042_v15 = vpop.f32.mrb[27].mxu0 }
0x1a7e   :  { %3279 = vpow2.f32 %v2786_v13  ;;  %v2787_v50 = vmul.f32 -1.442695, %v1715_v48 }
0x1a80   :  { %3281 = vpow2.f32 %v2787_v50 }
0x1a81   :  { %v3856_v51 = vpop.f32.mrb[28].mxu0 }
0x1a82   :  { %v3858_v52 = vpop.f32.mrb[29].mxu0 }
0x1a83   :  { %v3860_v54 = vpop.f32.mrb[30].mxu0 }
0x1a84   :  { %v3862_v12 = vpop.f32.mrb[31].mxu0 }
0x1a85   :  { %v1973_v20 = vadd.f32 %v3783_v8, %v3862_v12 }
0x1a88   :  { %v3280_v55 = vpop.eup %3279 }
0x1a89   :  { %v1722_v57 = vadd.f32 1.0, %v3280_v55 }
0x1a8a   :  { %v3282_v21 = vpop.eup %3281 }
0x1a8b   :  { %3283 = vrcp.f32 %v1722_v57  ;;  %v1723_v58 = vadd.f32 1.0, %v3282_v21 }
0x1a8d   :  { %3285 = vrcp.f32 %v1723_v58 }
0x1a95   :  { %v3284_v47 = vpop.eup %3283 }
0x1a96   :  { %v1728_v59 = vmul.f32 2.0, %v3284_v47 }
0x1a97   :  { %v3286_v17 = vpop.eup %3285 }
0x1a98   :  { %v2788_v49 = vadd.f32 -1.0, %v1728_v59  ;;  %v1729_v1 = vmul.f32 2.0, %v3286_v17 }
0x1a9a   :  { %v1732_v60 = vsel %vm3501_vm4, %v2788_v49, %v3284_v47  ;;  %v2789_v61 = vadd.f32 -1.0, %v1729_v1 }
0x1a9b   :  { %1738 = vrot.lane.b32.xlu1 %v1732_v60, %s3391_s3  ;;  %v1734_v5 = vmul.f32 %v1732_v60, %v3824_v22 }
0x1a9c   :  { %v1733_v62 = vsel %vm3501_vm4, %v2789_v61, %v3286_v17 }
0x1a9d   :  { %1740 = vrot.lane.b32.xlu0 %v1733_v62, %s3391_s3  ;;  %v1735_v16 = vmul.f32 %v1733_v62, %v3827_v23 }
0x1b0d   :  { %v1739_v2 = vpop.permute.xlu1 %1738 }
0x1b0e   :  { %v1744_v14 = vmul.f32 %v1739_v2, %v1732_v60  ;;  %v3162_v2 = vld [vmem:[%s4117_s5 + $0x8] sm:$0xff]  }
0x1b0f   :  { %v1741_v63 = vpop.permute.xlu0 %1740 }
0x1b10   :  { %v1745_v0 = vmul.f32 %v1741_v63, %v1733_v62  ;;  %1748 = vrot.lane.b32.xlu1 %v1744_v14, %s3392_s25 }
0x1b12   :  { %1750 = vrot.lane.b32.xlu0 %v1745_v0, %s3392_s25 }
0x1b82   :  { %v1749_v6 = vpop.permute.xlu1 %1748 }
0x1b83   :  { %v1754_v10 = vadd.f32 %v1749_v6, %v1734_v5 }
0x1b84   :  { %v1751_v19 = vpop.permute.xlu0 %1750 }
0x1b85   :  { %3287 = vtanh.f32 %v1754_v10  ;;  %v1755_v9 = vadd.f32 %v1751_v19, %v1735_v16 }
0x1b87   :  { %3289 = vtanh.f32 %v1755_v9 }
0x1b8f   :  { %v3288_v22 = vpop.eup %3287 }
0x1b90   :  { %1760 = vrot.lane.b32.xlu1 %v3288_v22, %s3391_s3 }
0x1b91   :  { %v3290_v23 = vpop.eup %3289 }
0x1b92   :  { %1762 = vrot.lane.b32.xlu0 %v3290_v23, %s3391_s3 }
0x1c02   :  { %v1761_v24 = vpop.permute.xlu1 %1760 }
0x1c03   :  { %v1766_v25 = vmul.f32 %v1761_v24, %v1732_v60 }
0x1c04   :  { %v1763_v11 = vpop.permute.xlu0 %1762 }
0x1c05   :  { %v1767_v26 = vmul.f32 %v1763_v11, %v1733_v62  ;;  %v3161_v62 = vld [vmem:[%s4117_s5] sm:$0xff]  }
0x1c07   :  { %v1768_v27 = vpack.c.bf16 %v1767_v26, %v1766_v25 }
0x1c09   :  { %1770 = vrot.lane.b32.xlu1 %v1768_v27, %s3392_s25 }
0x1c7b   :  { %v1771_v28 = vpop.permute.xlu1 %1770 }
0x1c7c   :  { %1773 = vst.msk [vmem:[#allocation2 + $0x10] sm:$0xff] %vm186_vm5, %v1771_v28  ;;  %3048 = vmatmul.mubr.msk.bf16.vlgmr.msra.gmra.mrb[40].mxu1 %vm186_vm5, %v1771_v28 }
0x1c7d   :  { %3067 = vmatprep.mubr.msk.bf16.mxu1 %vm3389_vm1, %v3388_v3  ;;  %3064 = vmatpush3.bf16.msra.mxu1 %v3161_v62 }
0x1c7e   :  { %3065 = vmatprep.subr.bf16.mxu1 %v3388_v3 }
0x1c81   :  { %3066 = vmatpush3.bf16.msra.mxu1 %v3162_v2 }
0x1c82   :  { %3071 = vmatprep.subr.bf16.mxu1 %v3388_v3 }
0x1d4f   :  { %v1829_v30 = vpop.f32.mrb[40].mxu1 }
0x1d50   :  { %v1836_v33 = vadd.f32 %v1829_v30, %v1397_v29  ;;  %v3049_v36 = vpop.f32.mrb[41].mxu1 }
0x1d51   :  { %v1832_v38 = vpop.f32.mrb[42].mxu1 }
0x1d52   :  { %v2793_v40 = vmul.f32 -1.442695, %v1836_v33  ;;  %v1837_v31 = vadd.f32 %v1832_v38, %v1400_v32  ;;  %v3050_v41 = vpop.f32.mrb[43].mxu1 }
0x1d54   :  { %3291 = vpow2.f32 %v2793_v40  ;;  %v2794_v34 = vmul.f32 -1.442695, %v1837_v31 }
0x1d56   :  { %3293 = vpow2.f32 %v2794_v34 }
0x1d5e   :  { %v3292_v42 = vpop.eup %3291 }
0x1d5f   :  { %v1844_v43 = vadd.f32 1.0, %v3292_v42 }
0x1d60   :  { %v3294_v44 = vpop.eup %3293 }
0x1d61   :  { %3295 = vrcp.f32 %v1844_v43  ;;  %v1845_v45 = vadd.f32 1.0, %v3294_v44 }
0x1d63   :  { %3297 = vrcp.f32 %v1845_v45  ;;  %v2759_v45 = vmul.f32 -1.442695, %v3776_v53 }
0x1d6b   :  { %v3296_v7 = vpop.eup %3295 }
0x1d6c   :  { %v1850_v46 = vmul.f32 2.0, %v3296_v7 }
0x1d6d   :  { %v3298_v13 = vpop.eup %3297 }
0x1d6e   :  { %v2795_v48 = vadd.f32 -1.0, %v1850_v46  ;;  %v1851_v18 = vmul.f32 2.0, %v3298_v13 }
0x1d70   :  { %v1854_v15 = vsel %vm3501_vm4, %v2795_v48, %v3296_v7  ;;  %v2796_v50 = vadd.f32 -1.0, %v1851_v18 }
0x1d71   :  { %1860 = vrot.lane.b32.xlu0 %v1854_v15, %s3391_s3  ;;  %v1856_v59 = vmul.f32 %v1854_v15, %v1754_v10 }
0x1d72   :  { %v1855_v55 = vsel %vm3501_vm4, %v2796_v50, %v3298_v13 }
0x1d73   :  { %1862 = vrot.lane.b32.xlu1 %v1855_v55, %s3391_s3  ;;  %v1857_v1 = vmul.f32 %v1855_v55, %v1755_v9  ;;  %v1970_v9 = vadd.f32 %v3783_v8, %v3858_v52 }
0x1de3   :  { %v1861_v57 = vpop.permute.xlu0 %1860 }
0x1de4   :  { %v1866_v21 = vmul.f32 %v1861_v57, %v1854_v15 }
0x1de5   :  { %v1863_v58 = vpop.permute.xlu1 %1862 }
0x1de6   :  { %v1867_v47 = vmul.f32 %v1863_v58, %v1855_v55  ;;  %1870 = vrot.lane.b32.xlu0 %v1866_v21, %s3392_s25  ;;  %v3163_v21 = vld [vmem:[%s4117_s5] sm:$0xff]  }
0x1de8   :  { %1872 = vrot.lane.b32.xlu1 %v1867_v47, %s3392_s25  ;;  %v3164_v47 = vld [vmem:[%s4117_s5 + $0x8] sm:$0xff]  }
0x1e58   :  { %v1871_v17 = vpop.permute.xlu0 %1870 }
0x1e59   :  { %v3901_v49 = vadd.f32 %v1871_v17, %v1856_v59 }
0x1e5a   :  { %v1873_v60 = vpop.permute.xlu1 %1872 }
0x1e5b   :  { %3299 = vtanh.f32 %v3901_v49  ;;  %v3904_v61 = vadd.f32 %v1873_v60, %v1857_v1  ;;  %v2760_v1 = vmul.f32 -1.442695, %v3778_v56 }
0x1e5d   :  { %3301 = vtanh.f32 %v3904_v61 }
0x1e65   :  { %v3300_v14 = vpop.eup %3299 }
0x1e66   :  { %1882 = vrot.lane.b32.xlu0 %v3300_v14, %s3391_s3 }
0x1e67   :  { %v3302_v63 = vpop.eup %3301 }
0x1e68   :  { %1884 = vrot.lane.b32.xlu1 %v3302_v63, %s3391_s3 }
0x1ed8   :  { %v1883_v0 = vpop.permute.xlu0 %1882 }
0x1ed9   :  { %v1888_v6 = vmul.f32 %v1883_v0, %v1854_v15 }
0x1eda   :  { %v1885_v5 = vpop.permute.xlu1 %1884 }
0x1edb   :  { %v1889_v10 = vmul.f32 %v1885_v5, %v1855_v55 }
0x1edd   :  { %v1890_v16 = vpack.c.bf16 %v1889_v10, %v1888_v6 }
0x1edf   :  { %1892 = vrot.lane.b32.xlu0 %v1890_v16, %s3392_s25 }
0x1f51   :  { %v1893_v19 = vpop.permute.xlu0 %1892 }
0x1f52   :  { %1895 = vst.msk [vmem:[#allocation2 + $0x18] sm:$0xff] %vm186_vm5, %v1893_v19  ;;  %3068 = vmatmul.mubr.msk.bf16.vlgmr.msra.gmra.mrb[44].mxu1 %vm186_vm5, %v1893_v19  ;;  %v1978_v19 = vadd.f32 %v3856_v51, %v3783_v8 }
0x1f53   :  { %3075 = vmatprep.mubr.msk.bf16.mxu1 %vm3389_vm1, %v3388_v3  ;;  %3072 = vmatpush3.bf16.msra.mxu1 %v3163_v21 }
0x1f54   :  { %3073 = vmatprep.subr.bf16.mxu1 %v3388_v3 }
0x1f57   :  { %3074 = vmatpush3.bf16.msra.mxu1 %v3164_v47 }
0x1f58   :  { %3087 = vmatprep.subr.bf16.mxu1 %v3388_v3 }
0x2025   :  { %v2063_v4 = vpop.f32.mrb[44].mxu1 }
0x2026   :  { %v2070_v22 = vadd.f32 %v2063_v4, %v1970_v9  ;;  %v3069_v23 = vpop.f32.mrb[45].mxu1  ;;  %v1981_v4 = vadd.f32 %v3860_v54, %v3783_v8 }
0x2027   :  { %v2066_v24 = vpop.f32.mrb[46].mxu1 }
0x2028   :  { %v2807_v11 = vmul.f32 -1.442695, %v2070_v22  ;;  %v2071_v25 = vadd.f32 %v2066_v24, %v1973_v20  ;;  %v3070_v26 = vpop.f32.mrb[47].mxu1 }
0x202a   :  { %3303 = vpow2.f32 %v2807_v11  ;;  %v2808_v27 = vmul.f32 -1.442695, %v2071_v25 }
0x202c   :  { %3305 = vpow2.f32 %v2808_v27 }
0x2034   :  { %v3304_v28 = vpop.eup %3303 }
0x2035   :  { %v2078_v29 = vadd.f32 1.0, %v3304_v28 }
0x2036   :  { %v3306_v30 = vpop.eup %3305 }
0x2037   :  { %3307 = vrcp.f32 %v2078_v29  ;;  %v2079_v32 = vadd.f32 1.0, %v3306_v30 }
0x2039   :  { %3309 = vrcp.f32 %v2079_v32 }
0x203a   :  { %3311 = vpow2.f32 %v2759_v45 }
0x2041   :  { %v3308_v52 = vpop.eup %3307 }
0x2042   :  { %v2084_v33 = vmul.f32 2.0, %v3308_v52 }
0x2043   :  { %v3310_v36 = vpop.eup %3309 }
0x2044   :  { %v2809_v38 = vadd.f32 -1.0, %v2084_v33  ;;  %v2085_v12 = vmul.f32 2.0, %v3310_v36  ;;  %v3312_v7 = vpop.eup %3311 }
0x2045   :  { %v1242_v46 = vadd.f32 1.0, %v3312_v7 }
0x2046   :  { %v2088_v40 = vsel %vm3501_vm4, %v2809_v38, %v3308_v52  ;;  %v2810_v31 = vadd.f32 -1.0, %v2085_v12 }
0x2047   :  { %2094 = vrot.lane.b32.xlu1 %v2088_v40, %s3391_s3  ;;  %3313 = vrcp.f32 %v1242_v46  ;;  %v2090_v13 = vmul.f32 %v2088_v40, %v3901_v49 }
0x2048   :  { %v2089_v41 = vsel %vm3501_vm4, %v2810_v31, %v3310_v36 }
0x2049   :  { %2096 = vrot.lane.b32.xlu0 %v2089_v41, %s3391_s3  ;;  %v2091_v15 = vmul.f32 %v2089_v41, %v3904_v61 }
0x2051   :  { %v3314_v57 = vpop.eup %3313 }
0x2052   :  { %v1248_v53 = vmul.f32 2.0, %v3314_v57 }
0x2054   :  { %v2761_v17 = vadd.f32 -1.0, %v1248_v53 }
0x2056   :  { %v3955_v49 = vsel %vm3501_vm4, %v2761_v17, %v3314_v57 }
0x2057   :  { %v1254_v7 = vmul.f32 %v3955_v49, %v3739_v35 }
0x20b9   :  { %v2095_v34 = vpop.permute.xlu1 %2094 }
0x20ba   :  { %v2100_v42 = vmul.f32 %v2095_v34, %v2088_v40 }
0x20bb   :  { %v2097_v43 = vpop.permute.xlu0 %2096 }
0x20bc   :  { %v2101_v44 = vmul.f32 %v2097_v43, %v2089_v41  ;;  %2104 = vrot.lane.b32.xlu1 %v2100_v42, %s3392_s25 }
0x20be   :  { %2106 = vrot.lane.b32.xlu0 %v2101_v44, %s3392_s25 }
0x212e   :  { %v2105_v48 = vpop.permute.xlu1 %2104 }
0x212f   :  { %v3936_v18 = vadd.f32 %v2105_v48, %v2090_v13 }
0x2130   :  { %v2107_v50 = vpop.permute.xlu0 %2106 }
0x2131   :  { %3315 = vtanh.f32 %v3936_v18  ;;  %v3940_v55 = vadd.f32 %v2107_v50, %v2091_v15 }
0x2133   :  { %3317 = vtanh.f32 %v3940_v55 }
0x2134   :  { %3319 = vpow2.f32 %v2760_v1 }
0x213b   :  { %v3316_v58 = vpop.eup %3315 }
0x213c   :  { %2116 = vrot.lane.b32.xlu1 %v3316_v58, %s3391_s3 }
0x213d   :  { %v3318_v59 = vpop.eup %3317 }
0x213e   :  { %2118 = vrot.lane.b32.xlu0 %v3318_v59, %s3391_s3  ;;  %v3320_v60 = vpop.eup %3319 }
0x213f   :  { %v1243_v61 = vadd.f32 1.0, %v3320_v60 }
0x2141   :  { %3321 = vrcp.f32 %v1243_v61  ;;  %v3165_v61 = vld [vmem:[%s4117_s5] sm:$0xff]  }
0x2142   :  { %1258 = vrot.lane.b32.xlu0 %v3955_v49, %s3391_s3  ;;  %3080 = vmatpush3.bf16.msra.mxu0 %v3165_v61 }
0x2143   :  { %3081 = vmatprep.subr.bf16.mxu0 %v3388_v3 }
0x214b   :  { %v3322_v62 = vpop.eup %3321 }
0x214c   :  { %v1249_v63 = vmul.f32 2.0, %v3322_v62 }
0x214e   :  { %v2762_v10 = vadd.f32 -1.0, %v1249_v63  ;;  %v3167_v63 = vld [vmem:[%s4119_s7] sm:$0xff]  }
0x2150   :  { %v3963_v16 = vsel %vm3501_vm4, %v2762_v10, %v3322_v62 }
0x2151   :  { %v1255_v48 = vmul.f32 %v3963_v16, %v3743_v39 }
0x21ae   :  { %v2117_v2 = vpop.permute.xlu1 %2116 }
0x21af   :  { %v2122_v0 = vmul.f32 %v2117_v2, %v2088_v40  ;;  %v3166_v2 = vld [vmem:[%s4117_s5 + $0x8] sm:$0xff]  }
0x21b0   :  { %v2119_v14 = vpop.permute.xlu0 %2118  ;;  %3082 = vmatpush3.bf16.msra.mxu0 %v3166_v2 }
0x21b1   :  { %v2123_v5 = vmul.f32 %v2119_v14, %v2089_v41  ;;  %3095 = vmatprep.subr.bf16.mxu0 %v3167_v63 }
0x21b3   :  { %v2124_v6 = vpack.c.bf16 %v2123_v5, %v2122_v0 }
0x21b4   :  { %v1259_v36 = vpop.permute.xlu0 %1258 }
0x21b5   :  { %2126 = vrot.lane.b32.xlu1 %v2124_v6, %s3392_s25  ;;  %v1264_v41 = vmul.f32 %v1259_v36, %v3955_v49 }
0x21b9   :  { %1260 = vrot.lane.b32.xlu1 %v3963_v16, %s3391_s3 }
0x2227   :  { %v2127_v56 = vpop.permute.xlu1 %2126 }
0x2228   :  { %2129 = vst.msk [vmem:[#allocation2 + $0x20] sm:$0xff] %vm186_vm5, %v2127_v56  ;;  %3076 = vmatmul.mubr.msk.bf16.vlgmr.msra.gmra.mrb[48].mxu1 %vm186_vm5, %v2127_v56 }
0x2229   :  { %3091 = vmatprep.mubr.msk.bf16.mxu1 %vm3389_vm1, %v3388_v3 }
0x222b   :  { %v1261_v40 = vpop.permute.xlu1 %1260 }
0x222c   :  { %v1265_v34 = vmul.f32 %v1261_v40, %v3963_v16  ;;  %v4041_v40 = vld [vmem:[%s4120_s8] ss:$0 sm:$0xff] }
0x22fb   :  { %v2185_v9 = vpop.f32.mrb[48].mxu1 }
0x22fc   :  { %v2192_v20 = vadd.f32 %v2185_v9, %v1978_v19  ;;  %v3077_v22 = vpop.f32.mrb[49].mxu1  ;;  %v3168_v19 = vld [vmem:[%s4119_s7 + $0x8] sm:$0xff]  }
0x22fd   :  { %v2188_v23 = vpop.f32.mrb[50].mxu1  ;;  %v2498_v22 = vld [vmem:[#allocation2 + $0x10] sm:$0xff] }
0x22fe   :  { %v2814_v24 = vmul.f32 -1.442695, %v2192_v20  ;;  %v2193_v11 = vadd.f32 %v2188_v23, %v1981_v4  ;;  %v3078_v25 = vpop.f32.mrb[51].mxu1  ;;  %v2496_v4 = vld [vmem:[#allocation2] sm:$0xff]  ;;  %v2497_v20 = vld [vmem:[#allocation2 + $0x8] sm:$0xff]  ;;  %v2499_v23 = vld [vmem:[#allocation2 + $0x18] sm:$0xff] }
0x2300   :  { %3323 = vpow2.f32 %v2814_v24  ;;  %v2815_v26 = vmul.f32 -1.442695, %v2193_v11  ;;  %v2500_v24 = vld [vmem:[#allocation2 + $0x20] sm:$0xff] }
0x2302   :  { %3325 = vpow2.f32 %v2815_v26 }
0x230a   :  { %v3324_v27 = vpop.eup %3323 }
0x230b   :  { %v2200_v28 = vadd.f32 1.0, %v3324_v27 }
0x230c   :  { %v3326_v29 = vpop.eup %3325 }
0x230d   :  { %3327 = vrcp.f32 %v2200_v28  ;;  %v2201_v30 = vadd.f32 1.0, %v3326_v29 }
0x230f   :  { %3329 = vrcp.f32 %v2201_v30 }
0x2317   :  { %v3328_v51 = vpop.eup %3327 }
0x2318   :  { %v2206_v32 = vmul.f32 2.0, %v3328_v51 }
0x2319   :  { %v3330_v52 = vpop.eup %3329 }
0x231a   :  { %v2816_v33 = vadd.f32 -1.0, %v2206_v32  ;;  %v2207_v54 = vmul.f32 2.0, %v3330_v52 }
0x231c   :  { %v2210_v38 = vsel %vm3501_vm4, %v2816_v33, %v3328_v51  ;;  %v2817_v12 = vadd.f32 -1.0, %v2207_v54 }
0x231d   :  { %2216 = vrot.lane.b32.xlu0 %v2210_v38, %s3391_s3  ;;  %v2212_v21 = vmul.f32 %v2210_v38, %v3936_v18 }
0x231e   :  { %v2211_v31 = vsel %vm3501_vm4, %v2817_v12, %v3330_v52 }
0x231f   :  { %2218 = vrot.lane.b32.xlu1 %v2211_v31, %s3391_s3  ;;  %v2213_v47 = vmul.f32 %v2211_v31, %v3940_v55 }
0x2321   :  { %1268 = vrot.lane.b32.xlu0 %v1264_v41, %s3392_s25 }
0x2323   :  { %1270 = vrot.lane.b32.xlu1 %v1265_v34, %s3392_s25 }
0x238f   :  { %v2217_v42 = vpop.permute.xlu0 %2216 }
0x2390   :  { %v2222_v43 = vmul.f32 %v2217_v42, %v2210_v38 }
0x2391   :  { %v2219_v44 = vpop.permute.xlu1 %2218 }
0x2392   :  { %v2223_v45 = vmul.f32 %v2219_v44, %v2211_v31  ;;  %2226 = vrot.lane.b32.xlu0 %v2222_v43, %s3392_s25 }
0x2393   :  { %v1269_v46 = vpop.permute.xlu0 %1268 }
0x2394   :  { %v1274_v13 = vadd.f32 %v1269_v46, %v1254_v7  ;;  %2228 = vrot.lane.b32.xlu1 %v2223_v45, %s3392_s25 }
0x2395   :  { %v1271_v15 = vpop.permute.xlu1 %1270 }
0x2396   :  { %3331 = vtanh.f32 %v1274_v13  ;;  %v1275_v50 = vadd.f32 %v1271_v15, %v1255_v48 }
0x2398   :  { %3333 = vtanh.f32 %v1275_v50 }
0x23a0   :  { %v3332_v57 = vpop.eup %3331 }
0x23a1   :  { %1280 = vrot.lane.b32.xlu0 %v3332_v57, %s3391_s3 }
0x23a2   :  { %v3334_v53 = vpop.eup %3333 }
0x23a3   :  { %1282 = vrot.lane.b32.xlu1 %v3334_v53, %s3391_s3 }
0x2404   :  { %v2227_v35 = vpop.permute.xlu0 %2226 }
0x2405   :  { %v3994_v58 = vadd.f32 %v2227_v35, %v2212_v21 }
0x2406   :  { %v2229_v59 = vpop.permute.xlu1 %2228 }
0x2407   :  { %3335 = vtanh.f32 %v3994_v58  ;;  %v3998_v39 = vadd.f32 %v2229_v59, %v2213_v47 }
0x2409   :  { %3337 = vtanh.f32 %v3998_v39 }
0x2411   :  { %v3336_v17 = vpop.eup %3335 }
0x2412   :  { %2238 = vrot.lane.b32.xlu0 %v3336_v17, %s3391_s3 }
0x2413   :  { %v3338_v1 = vpop.eup %3337  ;;  %v1281_v60 = vpop.permute.xlu0 %1280 }
0x2414   :  { %2240 = vrot.lane.b32.xlu1 %v3338_v1, %s3391_s3  ;;  %v1286_v55 = vmul.f32 %v1281_v60, %v3955_v49 }
0x2415   :  { %v1283_v18 = vpop.permute.xlu1 %1282 }
0x2416   :  { %v1287_v62 = vmul.f32 %v1283_v18, %v3963_v16 }
0x2418   :  { %v1288_v14 = vpack.c.bf16 %v1287_v62, %v1286_v55 }
0x241a   :  { %1291 = vrot.lane.b32.xlu0 %v1288_v14, %s3392_s25 }
0x2484   :  { %v2239_v0 = vpop.permute.xlu0 %2238 }
0x2485   :  { %v2244_v5 = vmul.f32 %v2239_v0, %v2210_v38 }
0x2486   :  { %v2241_v49 = vpop.permute.xlu1 %2240 }
0x2487   :  { %v2245_v6 = vmul.f32 %v2241_v49, %v2211_v31 }
0x2489   :  { %v2246_v10 = vpack.c.bf16 %v2245_v6, %v2244_v5 }
0x248b   :  { %2248 = vrot.lane.b32.xlu1 %v2246_v10, %s3392_s25 }
0x248c   :  { %v1292_v16 = vpop.permute.xlu0 %1291 }
0x248d   :  { %1298 = vst.msk [vmem:[#allocation2 + $0x38] sm:$0xff] %vm186_vm5, %v1292_v16 }
0x2494   :  { %v1899_v56 = vld [vmem:[#allocation2 + $0x38] sm:$0xff] }
0x2495   :  { %3060 = vmatmul.mubr.msk.bf16.gmra.mrb[32].mxu0 %vm186_vm5, %v1899_v56 }
0x2496   :  { %3083 = vmatprep.mubr.msk.bf16.mxu0 %vm3389_vm1, %v3388_v3 }
0x24fd   :  { %v2249_v9 = vpop.permute.xlu1 %2248 }
0x24fe   :  { %2251 = vst.msk [vmem:[#allocation2 + $0x28] sm:$0xff] %vm186_vm5, %v2249_v9  ;;  %3084 = vmatmul.mubr.msk.bf16.vlgmr.msra.gmra.mrb[36].mxu0 %vm186_vm5, %v2249_v9 }
0x24ff   :  { %3096 = vmatpush3.bf16.msra.mxu0 %v3167_v63  ;;  %3099 = vmatprep.mubr.msk.bf16.mxu0 %vm186_vm5, %v2496_v4 }
0x2500   :  { %3097 = vmatprep.subr.bf16.mxu0 %v3168_v19 }
0x2503   :  { %3098 = vmatpush3.bf16.msra.mxu0 %v3168_v19 }
0x2505   :  { %v2501_v11 = vld [vmem:[#allocation2 + $0x28] sm:$0xff] }
0x2506   :  { %3100 = vmatmul.mubr.msk.bf16.vlgmr.msra.gmra.mrb[40].mxu0 %vm186_vm5, %v2497_v20 }
0x2507   :  { %3103 = vmatprep.mubr.msk.bf16.mxu0 %vm186_vm5, %v2498_v22 }
0x250e   :  { %3104 = vmatmul.mubr.msk.bf16.gmra.mrb[44].mxu0 %vm186_vm5, %v2499_v23 }
0x250f   :  { %3107 = vmatprep.mubr.msk.bf16.mxu0 %vm186_vm5, %v2500_v24 }
0x2516   :  { %3108 = vmatmul.mubr.msk.bf16.gmra.mrb[48].mxu0 %vm186_vm5, %v2501_v11 }
0x2568   :  { %v4032_v25 = vpop.f32.mrb[32].mxu0 }
0x2569   :  { %v1985_v26 = vpop.f32.mrb[33].mxu0 }
0x256a   :  { %v4034_v27 = vpop.f32.mrb[34].mxu0  ;;  %v1986_v29 = vadd.f32 %v3783_v8, %v1985_v26 }
0x256b   :  { %v1988_v28 = vpop.f32.mrb[35].mxu0 }
0x256c   :  { %v1989_v51 = vadd.f32 %v3783_v8, %v1988_v28  ;;  %v3169_v28 = vld [vmem:[%s4117_s5] sm:$0xff]  }
0x256d   :  { %3088 = vmatpush3.bf16.msra.mxu1 %v3169_v28 }
0x256e   :  { %3089 = vmatprep.subr.bf16.mxu1 %v3388_v3 }
0x25d1   :  { %v2307_v30 = vpop.f32.mrb[36].mxu0 }
0x25d2   :  { %v2314_v32 = vadd.f32 %v2307_v30, %v1986_v29  ;;  %v3085_v52 = vpop.f32.mrb[37].mxu0  ;;  %v3170_v29 = vld [vmem:[%s4117_s5 + $0x8] sm:$0xff]  }
0x25d3   :  { %v2310_v33 = vpop.f32.mrb[38].mxu0  ;;  %3090 = vmatpush3.bf16.msra.mxu1 %v3170_v29 }
0x25d4   :  { %v2821_v54 = vmul.f32 -1.442695, %v2314_v32  ;;  %v2315_v36 = vadd.f32 %v2310_v33, %v1989_v51  ;;  %v3086_v38 = vpop.f32.mrb[39].mxu0 }
0x25d6   :  { %3339 = vpow2.f32 %v2821_v54  ;;  %v2822_v12 = vmul.f32 -1.442695, %v2315_v36  ;;  %v3363_v36 = vld [vmem:[%s4118_s6] ss:$0 sm:$0xff]  ;;  %s3393_s6 = smov [#allocation4]  }
0x25d7   :  { %v1994_v38 = vadd.f32 %v3363_v36, %v4032_v25  ;;  %s2669_s20 = sshll.u32 %s3393_s6, 4  ;;  %s2670_s20 = int_to_ptr.vmem [resolvable:$true] %s2669_s20 }
0x25d8   :  { %3341 = vpow2.f32 %v2822_v12  ;;  %p3369_p1 = scmp.lt.s32.totalorder %s2670_s20, %s2670_s20 }
0x25d9   :  { %v3101_v31 = vpop.f32.mrb[40].mxu0 }
0x25da   :  { %v2594_v41 = vadd.f32 %v3101_v31, %v4041_v40  ;;  %v2585_v34 = vpop.f32.mrb[41].mxu0  ;;  %v1997_v31 = vadd.f32 %v3363_v36, %v4034_v27 }
0x25db   :  { %v2586_v8 = vadd.f32 %v4041_v40, %v2585_v34  ;;  %v3102_v42 = vpop.f32.mrb[42].mxu0 }
0x25dc   :  { %2650 = vst [vmem:[#allocation4 + $0x10] sm:$0xff] %v2594_v41  ;;  %v2597_v43 = vadd.f32 %v3102_v42, %v4041_v40  ;;  %v2588_v44 = vpop.f32.mrb[43].mxu0 }
0x25dd   :  { %2648 = vst [vmem:[#allocation4] sm:$0xff] %v2586_v8  ;;  %v2589_v45 = vadd.f32 %v4041_v40, %v2588_v44 }
0x25de   :  { %2651 = vst [vmem:[#allocation4 + $0x18] sm:$0xff] %v2597_v43 }
0x25df   :  { %2649 = vst [vmem:[#allocation4 + $0x8] sm:$0xff] %v2589_v45 }
0x25e0   :  { %v3340_v7 = vpop.eup %3339 }
0x25e1   :  { %v2322_v46 = vadd.f32 1.0, %v3340_v7  ;;  %v3105_v13 = vpop.f32.mrb[44].mxu0 }
0x25e2   :  { %v3342_v48 = vpop.eup %3341  ;;  %v2610_v15 = vadd.f32 %v3105_v13, %v4041_v40  ;;  %v2601_v50 = vpop.f32.mrb[45].mxu0 }
0x25e3   :  { %3343 = vrcp.f32 %v2322_v46  ;;  %v2323_v57 = vadd.f32 1.0, %v3342_v48  ;;  %v2602_v53 = vadd.f32 %v4041_v40, %v2601_v50  ;;  %v3106_v21 = vpop.f32.mrb[46].mxu0 }
0x25e4   :  { %2654 = vst [vmem:[#allocation4 + $0x30] sm:$0xff] %v2610_v15  ;;  %v2613_v35 = vadd.f32 %v3106_v21, %v4041_v40  ;;  %v2604_v47 = vpop.f32.mrb[47].mxu0 }
0x25e5   :  { %3345 = vrcp.f32 %v2323_v57  ;;  %2652 = vst [vmem:[#allocation4 + $0x20] sm:$0xff] %v2602_v53  ;;  %v2605_v59 = vadd.f32 %v4041_v40, %v2604_v47 }
0x25e6   :  { %2655 = vst [vmem:[#allocation4 + $0x38] sm:$0xff] %v2613_v35 }
0x25e7   :  { %2653 = vst [vmem:[#allocation4 + $0x28] sm:$0xff] %v2605_v59 }
0x25e9   :  { %v3109_v17 = vpop.f32.mrb[48].mxu0 }
0x25ea   :  { %v2626_v1 = vadd.f32 %v3109_v17, %v4041_v40  ;;  %v2617_v60 = vpop.f32.mrb[49].mxu0 }
0x25eb   :  { %v2618_v18 = vadd.f32 %v4041_v40, %v2617_v60  ;;  %v3110_v61 = vpop.f32.mrb[50].mxu0 }
0x25ec   :  { %2658 = vst [vmem:[#allocation4 + $0x50] sm:$0xff] %v2626_v1  ;;  %v2629_v55 = vadd.f32 %v3110_v61, %v4041_v40  ;;  %v2620_v62 = vpop.f32.mrb[51].mxu0 }
0x25ed   :  { %v3344_v2 = vpop.eup %3343  ;;  %2656 = vst [vmem:[#allocation4 + $0x40] sm:$0xff] %v2618_v18  ;;  %v2621_v14 = vadd.f32 %v4041_v40, %v2620_v62 }
0x25ee   :  { %2659 = vst [vmem:[#allocation4 + $0x58] sm:$0xff] %v2629_v55  ;;  %v2328_v63 = vmul.f32 2.0, %v3344_v2 }
0x25ef   :  { %v3346_v0 = vpop.eup %3345  ;;  %2657 = vst [vmem:[#allocation4 + $0x48] sm:$0xff] %v2621_v14 }
0x25f0   :  { %v2823_v49 = vadd.f32 -1.0, %v2328_v63  ;;  %v2329_v5 = vmul.f32 2.0, %v3346_v0 }
0x25f2   :  { %v2332_v6 = vsel %vm3501_vm4, %v2823_v49, %v3344_v2  ;;  %v2824_v10 = vadd.f32 -1.0, %v2329_v5 }
0x25f3   :  { %2338 = vrot.lane.b32.xlu0 %v2332_v6, %s3391_s3  ;;  %v2334_v20 = vmul.f32 %v2332_v6, %v3994_v58 }
0x25f4   :  { %v2333_v16 = vsel %vm3501_vm4, %v2824_v10, %v3346_v0 }
0x25f5   :  { %2340 = vrot.lane.b32.xlu1 %v2333_v16, %s3391_s3  ;;  %v2335_v24 = vmul.f32 %v2333_v16, %v3998_v39 }
0x2665   :  { %v2339_v56 = vpop.permute.xlu0 %2338 }
0x2666   :  { %v2344_v19 = vmul.f32 %v2339_v56, %v2332_v6 }
0x2667   :  { %v2341_v9 = vpop.permute.xlu1 %2340 }
0x2668   :  { %v2345_v4 = vmul.f32 %v2341_v9, %v2333_v16  ;;  %2348 = vrot.lane.b32.xlu0 %v2344_v19, %s3392_s25 }
0x266a   :  { %2350 = vrot.lane.b32.xlu1 %v2345_v4, %s3392_s25 }
0x26da   :  { %v2349_v22 = vpop.permute.xlu0 %2348 }
0x26db   :  { %v2354_v23 = vadd.f32 %v2349_v22, %v2334_v20 }
0x26dc   :  { %v2351_v11 = vpop.permute.xlu1 %2350 }
0x26dd   :  { %3347 = vtanh.f32 %v2354_v23  ;;  %v2355_v26 = vadd.f32 %v2351_v11, %v2335_v24 }
0x26df   :  { %3349 = vtanh.f32 %v2355_v26 }
0x26e7   :  { %v3348_v58 = vpop.eup %3347 }
0x26e8   :  { %2360 = vrot.lane.b32.xlu0 %v3348_v58, %s3391_s3 }
0x26e9   :  { %v3350_v39 = vpop.eup %3349 }
0x26ea   :  { %2362 = vrot.lane.b32.xlu1 %v3350_v39, %s3391_s3 }
0x275a   :  { %v2361_v30 = vpop.permute.xlu0 %2360 }
0x275b   :  { %v2366_v32 = vmul.f32 %v2361_v30, %v2332_v6 }
0x275c   :  { %v2363_v51 = vpop.permute.xlu1 %2362 }
0x275d   :  { %v2367_v52 = vmul.f32 %v2363_v51, %v2333_v16 }
0x275f   :  { %v2368_v33 = vpack.c.bf16 %v2367_v52, %v2366_v32 }
0x2761   :  { %2370 = vrot.lane.b32.xlu0 %v2368_v33, %s3392_s25 }
0x27d3   :  { %v2371_v54 = vpop.permute.xlu0 %2370 }
0x27d4   :  { %2373 = vst.msk [vmem:[#allocation2 + $0x30] sm:$0xff] %vm186_vm5, %v2371_v54  ;;  %3092 = vmatmul.mubr.msk.bf16.vlgmr.msra.gmra.mrb[52].mxu1 %vm186_vm5, %v2371_v54 }
0x27db   :  { %v2502_v3 = vld [vmem:[#allocation2 + $0x30] sm:$0xff] }
0x27dc   :  { %3111 = vmatprep.mubr.msk.bf16.mxu0 %vm186_vm5, %v2502_v3 }
0x28a7   :  { %v2429_v12 = vpop.f32.mrb[52].mxu1 }
0x28a8   :  { %v2436_v41 = vadd.f32 %v2429_v12, %v1994_v38  ;;  %v3093_v34 = vpop.f32.mrb[53].mxu1 }
0x28a9   :  { %v2432_v8 = vpop.f32.mrb[54].mxu1 }
0x28aa   :  { %v2828_v42 = vmul.f32 -1.442695, %v2436_v41  ;;  %v2437_v43 = vadd.f32 %v2432_v8, %v1997_v31  ;;  %v3094_v44 = vpop.f32.mrb[55].mxu1 }
0x28ac   :  { %3351 = vpow2.f32 %v2828_v42  ;;  %v2829_v45 = vmul.f32 -1.442695, %v2437_v43 }
0x28ae   :  { %3353 = vpow2.f32 %v2829_v45 }
0x28b6   :  { %v3352_v7 = vpop.eup %3351 }
0x28b7   :  { %v2444_v46 = vadd.f32 1.0, %v3352_v7 }
0x28b8   :  { %v3354_v13 = vpop.eup %3353 }
0x28b9   :  { %3355 = vrcp.f32 %v2444_v46  ;;  %v2445_v48 = vadd.f32 1.0, %v3354_v13 }
0x28bb   :  { %3357 = vrcp.f32 %v2445_v48 }
0x28c3   :  { %v3356_v15 = vpop.eup %3355 }
0x28c4   :  { %v2450_v25 = vmul.f32 2.0, %v3356_v15 }
0x28c5   :  { %v3358_v50 = vpop.eup %3357 }
0x28c6   :  { %v2830_v57 = vadd.f32 -1.0, %v2450_v25  ;;  %v2451_v27 = vmul.f32 2.0, %v3358_v50 }
0x28c8   :  { %v2454_v53 = vsel %vm3501_vm4, %v2830_v57, %v3356_v15  ;;  %v2831_v21 = vadd.f32 -1.0, %v2451_v27 }
0x28c9   :  { %2460 = vrot.lane.b32.xlu1 %v2454_v53, %s3391_s3  ;;  %v2456_v60 = vmul.f32 %v2454_v53, %v2354_v23 }
0x28ca   :  { %v2455_v35 = vsel %vm3501_vm4, %v2831_v21, %v3358_v50 }
0x28cb   :  { %2462 = vrot.lane.b32.xlu0 %v2455_v35, %s3391_s3  ;;  %v2457_v55 = vmul.f32 %v2455_v35, %v2355_v26 }
0x293b   :  { %v2461_v47 = vpop.permute.xlu1 %2460 }
0x293c   :  { %v2466_v59 = vmul.f32 %v2461_v47, %v2454_v53 }
0x293d   :  { %v2463_v17 = vpop.permute.xlu0 %2462 }
0x293e   :  { %v2467_v1 = vmul.f32 %v2463_v17, %v2455_v35  ;;  %2470 = vrot.lane.b32.xlu1 %v2466_v59, %s3392_s25 }
0x2940   :  { %2472 = vrot.lane.b32.xlu0 %v2467_v1, %s3392_s25 }
0x29b0   :  { %v2471_v18 = vpop.permute.xlu1 %2470 }
0x29b1   :  { %v2476_v61 = vadd.f32 %v2471_v18, %v2456_v60 }
0x29b2   :  { %v2473_v62 = vpop.permute.xlu0 %2472 }
0x29b3   :  { %3359 = vtanh.f32 %v2476_v61  ;;  %v2477_v2 = vadd.f32 %v2473_v62, %v2457_v55 }
0x29b5   :  { %3361 = vtanh.f32 %v2477_v2 }
0x29bd   :  { %v3360_v37 = vpop.eup %3359 }
0x29be   :  { %2482 = vrot.lane.b32.xlu1 %v3360_v37, %s3391_s3 }
0x29bf   :  { %v3362_v14 = vpop.eup %3361 }
0x29c0   :  { %2484 = vrot.lane.b32.xlu0 %v3362_v14, %s3391_s3  ;;  %s3364_s3 = scalar_lea.vmem %s2670_s20, 2048 }
0x29c1   :  { %p3365_p0 = scmp.ne.s32.totalorder %s2670_s20, %s3364_s3  ;;  %p3370_p2 = scmp.lt.s32.totalorder %s3364_s3, %s3364_s3 }
0x29c3   :  { %p3371_p3 = por %p3370_p2, %p3369_p1 }
0x29c5   :  { %p3372_p4 = pnand %p3371_p3, %p3365_p0 }
0x2a30   :  { %v2483_v63 = vpop.permute.xlu1 %2482 }
0x2a31   :  { %v2488_v49 = vmul.f32 %v2483_v63, %v2454_v53 }
0x2a32   :  { %v2485_v0 = vpop.permute.xlu0 %2484 }
0x2a33   :  { %v2489_v5 = vmul.f32 %v2485_v0, %v2455_v35 }
0x2a35   :  { %v2490_v6 = vpack.c.bf16 %v2489_v5, %v2488_v49 }
0x2a37   :  { %2492 = vrot.lane.b32.xlu1 %v2490_v6, %s3392_s25 }
0x2aa9   :  { %v2493_v10 = vpop.permute.xlu1 %2492 }
0x2aaa   :  { %2495 = vst.msk [vmem:[#allocation2 + $0x38] sm:$0xff] %vm186_vm5, %v2493_v10 }
0x2ab1   :  { %v2503_v16 = vld [vmem:[#allocation2 + $0x38] sm:$0xff] }
0x2ab2   :  { %3112 = vmatmul.mubr.msk.bf16.gmra.mrb[52].mxu0 %vm186_vm5, %v2503_v16 }
0x2b85   :  { %v3113_v56 = vpop.f32.mrb[52].mxu0 }
0x2b86   :  { %v2642_v19 = vadd.f32 %v3113_v56, %v4041_v40  ;;  %v2633_v9 = vpop.f32.mrb[53].mxu0 }
0x2b87   :  { %v2634_v4 = vadd.f32 %v4041_v40, %v2633_v9  ;;  %v3114_v20 = vpop.f32.mrb[54].mxu0 }
0x2b88   :  { %2662 = vst [vmem:[#allocation4 + $0x70] sm:$0xff] %v2642_v19  ;;  %v2645_v22 = vadd.f32 %v3114_v20, %v4041_v40  ;;  %v2636_v23 = vpop.f32.mrb[55].mxu0 }
0x2b89   :  { %2660 = vst [vmem:[#allocation4 + $0x60] sm:$0xff] %v2634_v4  ;;  %v2637_v24 = vadd.f32 %v4041_v40, %v2636_v23 }
0x2b8a   :  { %2663 = vst [vmem:[#allocation4 + $0x78] sm:$0xff] %v2645_v22 }
0x2b8b   :  { %2661 = vst [vmem:[#allocation4 + $0x68] sm:$0xff] %v2637_v24 }
0x2b8c   :  { %3375 = shalt.err (!%p3372_p4)
}
0x2b8d   :  { %s3376_s22 = scalar_lea.hbm %s4121_s9, 2048 }
0x2b8e   :  { %p3377_p5 = scmp.ne.s32.totalorder %s4121_s9, %s3376_s22  ;;  %p3380_p6 = scmp.lt.u32.totalorder %s3376_s22, %s4121_s9 }
0x2b90   :  { %p3382_p7 = pnand %p3380_p6, %p3377_p5 }
0x2b92   :  { %3385 = shalt.err (!%p3382_p7)
}
0x2b93   :  { %s3394_s27 = smov 128   ;;  %s3395_s1 = smov 8  }
0x2b94   :  { %2675 = dma.vmem_to_hbm [thread:$0]  %s2670_s20, 2048, %s4121_s9, [#allocation5], %s3394_s27, %s3394_s27, %s3395_s1  }
0x2b95   :  { %3386 = dma.done.wait [#allocation5], 2048  }
0x2b96   :  { %3387 = vsyncadd [#allocation5], 4294965248 }
0x2b97   :  { %2679 = vsyncpa [#allocation5], 1 }

</bundles_post_ra>
